<compile_context>
chip_gen: v7x
topology: tpu7x:2x2x1
jax: 0.10.0
libtpu: 0.0.40
codegen_flags: <defaults>
</compile_context>

<pallas_src>
import functools

import jax
import jax.numpy as jnp
import numpy as np
from jax.experimental import pallas as pl
from jax.experimental.pallas import tpu as pltpu


def _round_up(x: int, m: int) -> int:
    return ((x + m - 1) // m) * m


def _cdiv(a: int, b: int) -> int:
    return -(-a // b)


def _vmem_capacity_bytes() -> int:
    """Chip-aware VMEM capacity; conservative 64 MiB (v7x per-TC) if unknown."""
    try:
        info = pltpu.get_tpu_info()
        cap = getattr(info, "vmem_capacity_bytes", None)
        if cap:
            return int(cap)
    except Exception:
        pass
    return 64 * 1024 * 1024


# ----------------------------------------------------------------------------
# Fast path: whole MLP in one kernel, weights VMEM-resident.
# ----------------------------------------------------------------------------
def _mlp_resident_kernel(num_layers, *refs):
    """Per-batch-tile MLP kernel.

    refs = (x_ref, W0, b0, W1, b1, ..., W_{L-1}, b_{L-1}, out_ref)
    x is bf16 [TM, in_pad]; weights are bf16 [in_pad, out_pad]; biases are
    f32 [1, out_pad]. Hidden activations are carried in bf16 (the next dot
    would round them to bf16 anyway); the final layer has no ReLU and is
    written in f32.
    """
    x_ref = refs[0]
    out_ref = refs[-1]
    params = refs[1:-1]

    h = x_ref[...]  # bf16 (TM, in_pad)
    for layer in range(num_layers):
        w_ref = params[2 * layer]       # bf16 (in_pad, out_pad)
        b_ref = params[2 * layer + 1]   # f32  (1, out_pad)
        acc = jnp.dot(h, w_ref[...], preferred_element_type=jnp.float32)
        acc = acc + b_ref[...]
        if layer != num_layers - 1:
            h = jnp.maximum(acc, 0.0).astype(jnp.bfloat16)
        else:
            h = acc
    out_ref[...] = h.astype(out_ref.dtype)


# ----------------------------------------------------------------------------
# Fallback path: per-layer M/N/K-tiled linear (+ optional ReLU).
# ----------------------------------------------------------------------------
def _linear_tiled_kernel(apply_relu, x_ref, w_ref, b_ref, o_ref, acc_ref):
    @pl.when(pl.program_id(2) == 0)
    def _():
        acc_ref[...] = jnp.zeros_like(acc_ref)

    acc_ref[...] += jnp.dot(x_ref[...], w_ref[...],
                            preferred_element_type=jnp.float32)

    @pl.when(pl.program_id(2) == pl.num_programs(2) - 1)
    def _():
        h = acc_ref[...] + b_ref[...]
        if apply_relu:
            h = jnp.maximum(h, 0.0)
        o_ref[...] = h.astype(o_ref.dtype)


def _pick_tile(dim: int, pref: int) -> int:
    t = pref
    while t >= 128:
        if dim % t == 0:
            return t
        t //= 2
    return dim


def _linear_tiled(x, w, b, *, apply_relu, out_dtype, tm, vmem_limit):
    """y = relu?(x @ w + b) with an M/N/K-tiled grid and an f32 accumulator."""
    M, K = x.shape
    N = w.shape[1]
    tk = _pick_tile(K, 512)
    tn = _pick_tile(N, 512)
    grid = (M // tm, N // tn, K // tk)

    kernel = functools.partial(_linear_tiled_kernel, apply_relu)
    return pl.pallas_call(
        kernel,
        out_shape=jax.ShapeDtypeStruct((M, N), out_dtype),
        grid=grid,
        in_specs=[
            pl.BlockSpec((tm, tk), lambda i, j, k: (i, k)),
            pl.BlockSpec((tk, tn), lambda i, j, k: (k, j)),
            pl.BlockSpec((1, tn), lambda i, j, k: (0, j)),
        ],
        out_specs=pl.BlockSpec((tm, tn), lambda i, j, k: (i, j)),
        scratch_shapes=[pltpu.VMEM((tm, tn), jnp.float32)],
        compiler_params=pltpu.CompilerParams(
            dimension_semantics=("parallel", "parallel", "arbitrary"),
            vmem_limit_bytes=vmem_limit),
    )(x, w, b)


# ----------------------------------------------------------------------------
# Wrapper
# ----------------------------------------------------------------------------
def mlp_1d_forward(x, weights, biases, *, max_tile=None, vmem_budget_bytes=None,
                   force_tiled=False):
    """Run the MLP forward pass with Pallas TPU kernels.

    x: [batch, *input_shape] float32
    weights: list of [in_features, out_features] float32 (already transposed)
    biases:  list of [out_features] float32
    """
    batch = x.shape[0]
    # Cast once in the wrapper: bf16 x halves HBM traffic and input VMEM.
    x_flat = x.reshape(batch, -1).astype(jnp.bfloat16)
    in_features = x_flat.shape[1]
    num_layers = len(weights)
    out_dim = weights[-1].shape[1]

    # Chip-aware VMEM accounting.
    cap = _vmem_capacity_bytes()
    if vmem_budget_bytes is None:
        vmem_budget_bytes = int(cap * 0.78)       # ~100 MiB on 128 MiB, ~50 MiB on v7x
    if max_tile is None:
        max_tile = 1024 if cap >= 128 * 1024 * 1024 else 512
    vmem_cap_limit = cap * 7 // 8                 # never request more than 7/8 of VMEM

    # ---- Pad every feature (lane) dim to a multiple of 128 -----------------
    dims = [in_features] + [w.shape[1] for w in weights]
    dims_pad = [_round_up(d, 128) for d in dims]
    in_pad, out_pad = dims_pad[0], dims_pad[-1]
    max_dim = max(dims_pad)

    w_pad_list, b_pad_list = [], []
    for i, (w, b) in enumerate(zip(weights, biases)):
        in_p, out_p = dims_pad[i], dims_pad[i + 1]
        wp = jnp.zeros((in_p, out_p), jnp.float32)
        wp = wp.at[: w.shape[0], : w.shape[1]].set(w.astype(jnp.float32))
        w_pad_list.append(wp.astype(jnp.bfloat16))  # bf16 weights in HBM/VMEM
        bp = jnp.zeros((1, out_p), jnp.float32)
        bp = bp.at[0, : b.shape[0]].set(b.astype(jnp.float32))
        b_pad_list.append(bp)

    weight_bytes = sum(int(np.prod(w.shape)) * 2 for w in w_pad_list)
    bias_bytes = sum(int(np.prod(b.shape)) * 4 for b in b_pad_list)
    param_bytes = weight_bytes + bias_bytes

    use_resident = (not force_tiled) and param_bytes <= int(0.6 * vmem_budget_bytes)

    if use_resident:
        # ------------------------- resident-weight path ---------------------
        def footprint(tm, param_copies):
            # x bf16 / out f32, double-buffered tiles.
            act_io = 2 * tm * in_pad * 2 + 2 * tm * out_pad * 4
            # f32 accumulator + bf16 hidden working set (rough upper bound).
            inter = 2 * tm * max_dim * 4 + tm * max_dim * 2
            return param_copies * param_bytes + act_io + inter

        # Largest TM that fits (params counted once: single-buffered).
        tm = max_tile
        while tm > 8 and footprint(tm, 1) > vmem_budget_bytes:
            tm //= 2
        tm = max(8, tm)

        # Batch-aware tiling: distribute the batch evenly over the minimum
        # number of tiles (avoids up-to-2x zero-row padding), and use >=2
        # tiles when possible so the parallel axis spans both v7x TensorCores.
        batch8 = _round_up(batch, 8)
        n_tiles = _cdiv(batch8, tm)
        if n_tiles == 1 and batch8 >= 16:
            n_tiles = 2
        tm = _round_up(_cdiv(batch8, n_tiles), 8)
        batch_pad = tm * n_tiles

        pads = ((0, batch_pad - batch), (0, in_pad - in_features))
        x_p = jnp.pad(x_flat, pads) if pads != ((0, 0), (0, 0)) else x_flat

        flat_params = []
        for wp, bp in zip(w_pad_list, b_pad_list):
            flat_params.append(wp)
            flat_params.append(bp)

        grid = (batch_pad // tm,)

        flops = 2 * batch_pad * sum(dims_pad[i] * dims_pad[i + 1]
                                    for i in range(num_layers))
        bytes_accessed = (batch_pad * in_pad * 2 + batch_pad * out_pad * 4
                          + param_bytes)
        cost = pl.CostEstimate(flops=int(flops), transcendentals=0,
                               bytes_accessed=int(bytes_accessed))

        # Limit sized so that even the double-buffered-param fallback fits.
        vmem_limit = int(min(vmem_cap_limit,
                             max(32 * 1024 * 1024, footprint(tm, 2) * 5 // 4)))

        kernel = functools.partial(_mlp_resident_kernel, num_layers)

        def build_and_run(single_buffer_params):
            def param_spec(shape):
                # Constant index_map -> stays resident, DMA'd once.
                if single_buffer_params:
                    return pl.BlockSpec(shape, lambda i: (0, 0),
                                        pipeline_mode=pl.Buffered(1))
                return pl.BlockSpec(shape, lambda i: (0, 0))

            in_specs = [pl.BlockSpec((tm, in_pad), lambda i: (i, 0))]
            for wp, bp in zip(w_pad_list, b_pad_list):
                in_specs.append(param_spec(wp.shape))
                in_specs.append(param_spec(bp.shape))
            out_specs = pl.BlockSpec((tm, out_pad), lambda i: (i, 0))

            return pl.pallas_call(
                kernel,
                out_shape=jax.ShapeDtypeStruct((batch_pad, out_pad), jnp.float32),
                grid=grid,
                in_specs=in_specs,
                out_specs=out_specs,
                compiler_params=pltpu.CompilerParams(
                    dimension_semantics=("parallel",),
                    vmem_limit_bytes=vmem_limit),
                cost_estimate=cost,
            )(x_p, *flat_params)

        try:
            # Single-buffer the grid-invariant params to reclaim VMEM.
            out = build_and_run(True)
        except Exception:
            # pipeline_mode=pl.Buffered(1) not supported on this JAX version;
            # retry with default double-buffered params (numerics unchanged).
            out = build_and_run(False)

        return out[:batch, :out_dim]

    # --------------------------- tiled fallback path -------------------------
    # Weights do not comfortably fit VMEM: per-layer M/N/K-tiled matmuls with
    # f32 accumulators; hidden activations stay bf16 between layers.
    batch8 = _round_up(batch, 8)
    n_tiles = _cdiv(batch8, 256)
    tm = _round_up(_cdiv(batch8, n_tiles), 8)
    batch_pad = tm * n_tiles
    x_p = jnp.pad(x_flat, ((0, batch_pad - batch), (0, in_pad - in_features)))
    vmem_limit = int(min(vmem_cap_limit, 48 * 1024 * 1024))

    h = x_p
    for i, (wp, bp) in enumerate(zip(w_pad_list, b_pad_list)):
        last = (i == num_layers - 1)
        h = _linear_tiled(h, wp, bp,
                          apply_relu=not last,
                          out_dtype=jnp.float32 if last else jnp.bfloat16,
                          tm=tm, vmem_limit=vmem_limit)
    return h[:batch, :out_dim]


# ----------------------------------------------------------------------------
# Parameter init matching the PyTorch module & pure-JAX references.
# ----------------------------------------------------------------------------
def init_mlp_params(key, input_shape, output_classes, layer_count, hidden_dim,
                    output_bottleneck=False, noise_conditional=False):
    """xavier_uniform_ weights, bias = 0.01. Weights stored as [in, out]."""
    in_features = int(np.prod(input_shape))
    if noise_conditional:
        in_features *= 2

    dims = [in_features, hidden_dim]
    for layer_num in range(1, layer_count + 1):
        is_last_hidden = output_bottleneck and layer_num == layer_count
        dims.append(2 if is_last_hidden else hidden_dim)
    dims.append(output_classes)

    weights, biases = [], []
    for i in range(len(dims) - 1):
        fan_in, fan_out = dims[i], dims[i + 1]
        key, sub = jax.random.split(key)
        a = float(np.sqrt(6.0 / (fan_in + fan_out)))
        # PyTorch weight is (out, in); we store the transpose (in, out).
        w = jax.random.uniform(sub, (fan_in, fan_out), jnp.float32,
                               minval=-a, maxval=a)
        b = jnp.full((fan_out,), 0.01, jnp.float32)
        weights.append(w)
        biases.append(b)
    return weights, biases


def reference_forward_f32(x, weights, biases):
    """Plain-JAX f32 reference (matches the PyTorch module's math)."""
    h = x.reshape(x.shape[0], -1).astype(jnp.float32)
    n = len(weights)
    for i, (w, b) in enumerate(zip(weights, biases)):
        h = h @ w + b
        if i != n - 1:
            h = jnp.maximum(h, 0.0)
    return h


def reference_forward_bf16(x, weights, biases):
    """Reference with exactly the kernel's bf16-in / f32-accumulate casting."""
    h = x.reshape(x.shape[0], -1).astype(jnp.bfloat16)
    n = len(weights)
    for i, (w, b) in enumerate(zip(weights, biases)):
        acc = jnp.dot(h, w.astype(jnp.bfloat16),
                      preferred_element_type=jnp.float32)
        acc = acc + b.astype(jnp.float32)
        if i != n - 1:
            h = jnp.maximum(acc, 0.0).astype(jnp.bfloat16)
        else:
            h = acc
    return h


if __name__ == "__main__":
    # Small, module-consistent shapes.
    batch = 2
    input_shape = (4, 16)      # -> in_features = 64
    hidden_dim = 32
    layer_count = 3
    output_classes = 16

    key = jax.random.PRNGKey(0)
    key, xkey = jax.random.split(key)
    x = jax.random.normal(xkey, (batch,) + input_shape, jnp.float32)

    weights, biases = init_mlp_params(
        key, input_shape, output_classes, layer_count, hidden_dim,
        output_bottleneck=False, noise_conditional=False)

    # Resident-weight fast path.
    out = jax.block_until_ready(mlp_1d_forward(x, weights, biases))
    assert out.shape == (batch, output_classes)

    # Exact-semantics check against a reference with matching bf16 casting.
    ref_bf16 = reference_forward_bf16(x, weights, biases)
    np.testing.assert_allclose(np.asarray(out), np.asarray(ref_bf16),
                               rtol=1e-3, atol=1e-3)

    # Sanity check against the pure-f32 math (bf16 rounding tolerance).
    ref_f32 = reference_forward_f32(x, weights, biases)
    np.testing.assert_allclose(np.asarray(out), np.asarray(ref_f32),
                               rtol=2e-2, atol=2e-2)

    # Exercise the tiled (non-resident-weight) fallback path as well.
    out_t = jax.block_until_ready(
        mlp_1d_forward(x, weights, biases, force_tiled=True))
    assert out_t.shape == (batch, output_classes)
    np.testing.assert_allclose(np.asarray(out_t), np.asarray(ref_bf16),
                               rtol=1e-3, atol=1e-3)

    print("KERNEL_OK")
</pallas_src>

<mosaic_0001>
module attributes {stable_mosaic.version = 11 : i64} {
  func.func @_mlp_resident_kernel(%arg0: i32, %arg1: memref<8x128xbf16, #tpu.memory_space<vmem>>, %arg2: memref<128x128xbf16, #tpu.memory_space<vmem>>, %arg3: memref<1x128xf32, #tpu.memory_space<vmem>>, %arg4: memref<128x128xbf16, #tpu.memory_space<vmem>>, %arg5: memref<1x128xf32, #tpu.memory_space<vmem>>, %arg6: memref<128x128xbf16, #tpu.memory_space<vmem>>, %arg7: memref<1x128xf32, #tpu.memory_space<vmem>>, %arg8: memref<128x128xbf16, #tpu.memory_space<vmem>>, %arg9: memref<1x128xf32, #tpu.memory_space<vmem>>, %arg10: memref<128x128xbf16, #tpu.memory_space<vmem>>, %arg11: memref<1x128xf32, #tpu.memory_space<vmem>>, %arg12: memref<8x128xf32, #tpu.memory_space<vmem>>) attributes {dimension_semantics = [#tpu.dimension_semantics<parallel>], iteration_bounds = array<i64: 1>, scalar_prefetch = 0 : i64, scratch_operands = 0 : i64, tpu.core_type = #tpu.core_type<tc>, window_params = [{transform_indices = @transform_0, window_bounds = array<i64: 8, 128>}, {pipeline_mode = #tpu.pipeline_mode<synchronous>, transform_indices = @transform_1, window_bounds = array<i64: 128, 128>}, {pipeline_mode = #tpu.pipeline_mode<synchronous>, transform_indices = @transform_2, window_bounds = array<i64: 1, 128>}, {pipeline_mode = #tpu.pipeline_mode<synchronous>, transform_indices = @transform_3, window_bounds = array<i64: 128, 128>}, {pipeline_mode = #tpu.pipeline_mode<synchronous>, transform_indices = @transform_4, window_bounds = array<i64: 1, 128>}, {pipeline_mode = #tpu.pipeline_mode<synchronous>, transform_indices = @transform_5, window_bounds = array<i64: 128, 128>}, {pipeline_mode = #tpu.pipeline_mode<synchronous>, transform_indices = @transform_6, window_bounds = array<i64: 1, 128>}, {pipeline_mode = #tpu.pipeline_mode<synchronous>, transform_indices = @transform_7, window_bounds = array<i64: 128, 128>}, {pipeline_mode = #tpu.pipeline_mode<synchronous>, transform_indices = @transform_8, window_bounds = array<i64: 1, 128>}, {pipeline_mode = #tpu.pipeline_mode<synchronous>, transform_indices = @transform_9, window_bounds = array<i64: 128, 128>}, {pipeline_mode = #tpu.pipeline_mode<synchronous>, transform_indices = @transform_10, window_bounds = array<i64: 1, 128>}, {transform_indices = @transform_11, window_bounds = array<i64: 8, 128>}]} {
    %c0 = arith.constant 0 : index
    %c0_0 = arith.constant 0 : index
    %0 = vector.load %arg1[%c0, %c0_0] : memref<8x128xbf16, #tpu.memory_space<vmem>>, vector<8x128xbf16>
    %c0_1 = arith.constant 0 : index
    %c0_2 = arith.constant 0 : index
    %1 = vector.load %arg2[%c0_1, %c0_2] : memref<128x128xbf16, #tpu.memory_space<vmem>>, vector<128x128xbf16>
    %cst = arith.constant dense<0.000000e+00> : vector<8x128xf32>
    %2 = tpu.matmul %0, %1, %cst {dimension_numbers = #tpu.dot_dimension_numbers<[1], [0], [0], [1], [0, 0, 1, 1], [], []>} : vector<8x128xbf16>, vector<128x128xbf16>, vector<8x128xf32> -> vector<8x128xf32>
    %c0_3 = arith.constant 0 : index
    %c0_4 = arith.constant 0 : index
    %3 = vector.load %arg3[%c0_3, %c0_4] : memref<1x128xf32, #tpu.memory_space<vmem>>, vector<1x128xf32>
    %4 = vector.broadcast %3 : vector<1x128xf32> to vector<8x128xf32>
    %5 = arith.addf %2, %4 : vector<8x128xf32>
    %cst_5 = arith.constant 0.000000e+00 : f32
    %6 = vector.broadcast %cst_5 : f32 to vector<8x128xf32>
    %7 = arith.maximumf %5, %6 : vector<8x128xf32>
    %8 = arith.truncf %7 : vector<8x128xf32> to vector<8x128xbf16>
    %c0_6 = arith.constant 0 : index
    %c0_7 = arith.constant 0 : index
    %9 = vector.load %arg4[%c0_6, %c0_7] : memref<128x128xbf16, #tpu.memory_space<vmem>>, vector<128x128xbf16>
    %cst_8 = arith.constant dense<0.000000e+00> : vector<8x128xf32>
    %10 = tpu.matmul %8, %9, %cst_8 {dimension_numbers = #tpu.dot_dimension_numbers<[1], [0], [0], [1], [0, 0, 1, 1], [], []>} : vector<8x128xbf16>, vector<128x128xbf16>, vector<8x128xf32> -> vector<8x128xf32>
    %c0_9 = arith.constant 0 : index
    %c0_10 = arith.constant 0 : index
    %11 = vector.load %arg5[%c0_9, %c0_10] : memref<1x128xf32, #tpu.memory_space<vmem>>, vector<1x128xf32>
    %12 = vector.broadcast %11 : vector<1x128xf32> to vector<8x128xf32>
    %13 = arith.addf %10, %12 : vector<8x128xf32>
    %cst_11 = arith.constant 0.000000e+00 : f32
    %14 = vector.broadcast %cst_11 : f32 to vector<8x128xf32>
    %15 = arith.maximumf %13, %14 : vector<8x128xf32>
    %16 = arith.truncf %15 : vector<8x128xf32> to vector<8x128xbf16>
    %c0_12 = arith.constant 0 : index
    %c0_13 = arith.constant 0 : index
    %17 = vector.load %arg6[%c0_12, %c0_13] : memref<128x128xbf16, #tpu.memory_space<vmem>>, vector<128x128xbf16>
    %cst_14 = arith.constant dense<0.000000e+00> : vector<8x128xf32>
    %18 = tpu.matmul %16, %17, %cst_14 {dimension_numbers = #tpu.dot_dimension_numbers<[1], [0], [0], [1], [0, 0, 1, 1], [], []>} : vector<8x128xbf16>, vector<128x128xbf16>, vector<8x128xf32> -> vector<8x128xf32>
    %c0_15 = arith.constant 0 : index
    %c0_16 = arith.constant 0 : index
    %19 = vector.load %arg7[%c0_15, %c0_16] : memref<1x128xf32, #tpu.memory_space<vmem>>, vector<1x128xf32>
    %20 = vector.broadcast %19 : vector<1x128xf32> to vector<8x128xf32>
    %21 = arith.addf %18, %20 : vector<8x128xf32>
    %cst_17 = arith.constant 0.000000e+00 : f32
    %22 = vector.broadcast %cst_17 : f32 to vector<8x128xf32>
    %23 = arith.maximumf %21, %22 : vector<8x128xf32>
    %24 = arith.truncf %23 : vector<8x128xf32> to vector<8x128xbf16>
    %c0_18 = arith.constant 0 : index
    %c0_19 = arith.constant 0 : index
    %25 = vector.load %arg8[%c0_18, %c0_19] : memref<128x128xbf16, #tpu.memory_space<vmem>>, vector<128x128xbf16>
    %cst_20 = arith.constant dense<0.000000e+00> : vector<8x128xf32>
    %26 = tpu.matmul %24, %25, %cst_20 {dimension_numbers = #tpu.dot_dimension_numbers<[1], [0], [0], [1], [0, 0, 1, 1], [], []>} : vector<8x128xbf16>, vector<128x128xbf16>, vector<8x128xf32> -> vector<8x128xf32>
    %c0_21 = arith.constant 0 : index
    %c0_22 = arith.constant 0 : index
    %27 = vector.load %arg9[%c0_21, %c0_22] : memref<1x128xf32, #tpu.memory_space<vmem>>, vector<1x128xf32>
    %28 = vector.broadcast %27 : vector<1x128xf32> to vector<8x128xf32>
    %29 = arith.addf %26, %28 : vector<8x128xf32>
    %cst_23 = arith.constant 0.000000e+00 : f32
    %30 = vector.broadcast %cst_23 : f32 to vector<8x128xf32>
    %31 = arith.maximumf %29, %30 : vector<8x128xf32>
    %32 = arith.truncf %31 : vector<8x128xf32> to vector<8x128xbf16>
    %c0_24 = arith.constant 0 : index
    %c0_25 = arith.constant 0 : index
    %33 = vector.load %arg10[%c0_24, %c0_25] : memref<128x128xbf16, #tpu.memory_space<vmem>>, vector<128x128xbf16>
    %cst_26 = arith.constant dense<0.000000e+00> : vector<8x128xf32>
    %34 = tpu.matmul %32, %33, %cst_26 {dimension_numbers = #tpu.dot_dimension_numbers<[1], [0], [0], [1], [0, 0, 1, 1], [], []>} : vector<8x128xbf16>, vector<128x128xbf16>, vector<8x128xf32> -> vector<8x128xf32>
    %c0_27 = arith.constant 0 : index
    %c0_28 = arith.constant 0 : index
    %35 = vector.load %arg11[%c0_27, %c0_28] : memref<1x128xf32, #tpu.memory_space<vmem>>, vector<1x128xf32>
    %36 = vector.broadcast %35 : vector<1x128xf32> to vector<8x128xf32>
    %37 = arith.addf %34, %36 : vector<8x128xf32>
    %c0_29 = arith.constant 0 : index
    %c0_30 = arith.constant 0 : index
    %38 = vector.load %arg12[%c0_29, %c0_30] : memref<8x128xf32, #tpu.memory_space<vmem>>, vector<8x128xf32>
    tpu.vector_store %arg12[%c0_29, %c0_30], %37 {strides = array<i32>} : memref<8x128xf32, #tpu.memory_space<vmem>>, vector<8x128xf32>,
    return
  }
  func.func @transform_0(%arg0: i32) -> (i32, i32) {
    %c0_i32 = arith.constant 0 : i32
    %c0_i32_0 = arith.constant 0 : i32
    return %arg0, %c0_i32 : i32, i32
  }
  func.func @transform_1(%arg0: i32) -> (i32, i32) {
    %c0_i32 = arith.constant 0 : i32
    %c0_i32_0 = arith.constant 0 : i32
    %c0_i32_1 = arith.constant 0 : i32
    return %c0_i32, %c0_i32_0 : i32, i32
  }
  func.func @transform_2(%arg0: i32) -> (i32, i32) {
    %c0_i32 = arith.constant 0 : i32
    %c0_i32_0 = arith.constant 0 : i32
    %c0_i32_1 = arith.constant 0 : i32
    return %c0_i32, %c0_i32_0 : i32, i32
  }
  func.func @transform_3(%arg0: i32) -> (i32, i32) {
    %c0_i32 = arith.constant 0 : i32
    %c0_i32_0 = arith.constant 0 : i32
    %c0_i32_1 = arith.constant 0 : i32
    return %c0_i32, %c0_i32_0 : i32, i32
  }
  func.func @transform_4(%arg0: i32) -> (i32, i32) {
    %c0_i32 = arith.constant 0 : i32
    %c0_i32_0 = arith.constant 0 : i32
    %c0_i32_1 = arith.constant 0 : i32
    return %c0_i32, %c0_i32_0 : i32, i32
  }
  func.func @transform_5(%arg0: i32) -> (i32, i32) {
    %c0_i32 = arith.constant 0 : i32
    %c0_i32_0 = arith.constant 0 : i32
    %c0_i32_1 = arith.constant 0 : i32
    return %c0_i32, %c0_i32_0 : i32, i32
  }
  func.func @transform_6(%arg0: i32) -> (i32, i32) {
    %c0_i32 = arith.constant 0 : i32
    %c0_i32_0 = arith.constant 0 : i32
    %c0_i32_1 = arith.constant 0 : i32
    return %c0_i32, %c0_i32_0 : i32, i32
  }
  func.func @transform_7(%arg0: i32) -> (i32, i32) {
    %c0_i32 = arith.constant 0 : i32
    %c0_i32_0 = arith.constant 0 : i32
    %c0_i32_1 = arith.constant 0 : i32
    return %c0_i32, %c0_i32_0 : i32, i32
  }
  func.func @transform_8(%arg0: i32) -> (i32, i32) {
    %c0_i32 = arith.constant 0 : i32
    %c0_i32_0 = arith.constant 0 : i32
    %c0_i32_1 = arith.constant 0 : i32
    return %c0_i32, %c0_i32_0 : i32, i32
  }
  func.func @transform_9(%arg0: i32) -> (i32, i32) {
    %c0_i32 = arith.constant 0 : i32
    %c0_i32_0 = arith.constant 0 : i32
    %c0_i32_1 = arith.constant 0 : i32
    return %c0_i32, %c0_i32_0 : i32, i32
  }
  func.func @transform_10(%arg0: i32) -> (i32, i32) {
    %c0_i32 = arith.constant 0 : i32
    %c0_i32_0 = arith.constant 0 : i32
    %c0_i32_1 = arith.constant 0 : i32
    return %c0_i32, %c0_i32_0 : i32, i32
  }
  func.func @transform_11(%arg0: i32) -> (i32, i32) {
    %c0_i32 = arith.constant 0 : i32
    %c0_i32_0 = arith.constant 0 : i32
    return %arg0, %c0_i32 : i32, i32
  }
}

module attributes {stable_mosaic.version = 11 : i64} {
  func.func @_mlp_resident_kernel(%arg0: i32, %arg1: memref<8x128xbf16, #tpu.memory_space<vmem>>, %arg2: memref<128x128xbf16, #tpu.memory_space<vmem>>, %arg3: memref<1x128xf32, #tpu.memory_space<vmem>>, %arg4: memref<128x128xbf16, #tpu.memory_space<vmem>>, %arg5: memref<1x128xf32, #tpu.memory_space<vmem>>, %arg6: memref<128x128xbf16, #tpu.memory_space<vmem>>, %arg7: memref<1x128xf32, #tpu.memory_space<vmem>>, %arg8: memref<128x128xbf16, #tpu.memory_space<vmem>>, %arg9: memref<1x128xf32, #tpu.memory_space<vmem>>, %arg10: memref<128x128xbf16, #tpu.memory_space<vmem>>, %arg11: memref<1x128xf32, #tpu.memory_space<vmem>>, %arg12: memref<8x128xf32, #tpu.memory_space<vmem>>) attributes {dimension_semantics = [#tpu.dimension_semantics<parallel>], iteration_bounds = array<i64: 1>, scalar_prefetch = 0 : i64, scratch_operands = 0 : i64, tpu.core_type = #tpu.core_type<tc>, window_params = [{transform_indices = @transform_0, window_bounds = array<i64: 8, 128>}, {pipeline_mode = #tpu.pipeline_mode<synchronous>, transform_indices = @transform_1, window_bounds = array<i64: 128, 128>}, {pipeline_mode = #tpu.pipeline_mode<synchronous>, transform_indices = @transform_2, window_bounds = array<i64: 1, 128>}, {pipeline_mode = #tpu.pipeline_mode<synchronous>, transform_indices = @transform_3, window_bounds = array<i64: 128, 128>}, {pipeline_mode = #tpu.pipeline_mode<synchronous>, transform_indices = @transform_4, window_bounds = array<i64: 1, 128>}, {pipeline_mode = #tpu.pipeline_mode<synchronous>, transform_indices = @transform_5, window_bounds = array<i64: 128, 128>}, {pipeline_mode = #tpu.pipeline_mode<synchronous>, transform_indices = @transform_6, window_bounds = array<i64: 1, 128>}, {pipeline_mode = #tpu.pipeline_mode<synchronous>, transform_indices = @transform_7, window_bounds = array<i64: 128, 128>}, {pipeline_mode = #tpu.pipeline_mode<synchronous>, transform_indices = @transform_8, window_bounds = array<i64: 1, 128>}, {pipeline_mode = #tpu.pipeline_mode<synchronous>, transform_indices = @transform_9, window_bounds = array<i64: 128, 128>}, {pipeline_mode = #tpu.pipeline_mode<synchronous>, transform_indices = @transform_10, window_bounds = array<i64: 1, 128>}, {transform_indices = @transform_11, window_bounds = array<i64: 8, 128>}]} {
    %c0 = arith.constant 0 : index
    %c0_0 = arith.constant 0 : index
    %0 = vector.load %arg1[%c0, %c0_0] : memref<8x128xbf16, #tpu.memory_space<vmem>>, vector<8x128xbf16>
    %c0_1 = arith.constant 0 : index
    %c0_2 = arith.constant 0 : index
    %1 = vector.load %arg2[%c0_1, %c0_2] : memref<128x128xbf16, #tpu.memory_space<vmem>>, vector<128x128xbf16>
    %cst = arith.constant dense<0.000000e+00> : vector<8x128xf32>
    %2 = tpu.matmul %0, %1, %cst {dimension_numbers = #tpu.dot_dimension_numbers<[1], [0], [0], [1], [0, 0, 1, 1], [], []>} : vector<8x128xbf16>, vector<128x128xbf16>, vector<8x128xf32> -> vector<8x128xf32>
    %c0_3 = arith.constant 0 : index
    %c0_4 = arith.constant 0 : index
    %3 = vector.load %arg3[%c0_3, %c0_4] : memref<1x128xf32, #tpu.memory_space<vmem>>, vector<1x128xf32>
    %4 = vector.broadcast %3 : vector<1x128xf32> to vector<8x128xf32>
    %5 = arith.addf %2, %4 : vector<8x128xf32>
    %cst_5 = arith.constant 0.000000e+00 : f32
    %6 = vector.broadcast %cst_5 : f32 to vector<8x128xf32>
    %7 = arith.maximumf %5, %6 : vector<8x128xf32>
    %8 = arith.truncf %7 : vector<8x128xf32> to vector<8x128xbf16>
    %c0_6 = arith.constant 0 : index
    %c0_7 = arith.constant 0 : index
    %9 = vector.load %arg4[%c0_6, %c0_7] : memref<128x128xbf16, #tpu.memory_space<vmem>>, vector<128x128xbf16>
    %cst_8 = arith.constant dense<0.000000e+00> : vector<8x128xf32>
    %10 = tpu.matmul %8, %9, %cst_8 {dimension_numbers = #tpu.dot_dimension_numbers<[1], [0], [0], [1], [0, 0, 1, 1], [], []>} : vector<8x128xbf16>, vector<128x128xbf16>, vector<8x128xf32> -> vector<8x128xf32>
    %c0_9 = arith.constant 0 : index
    %c0_10 = arith.constant 0 : index
    %11 = vector.load %arg5[%c0_9, %c0_10] : memref<1x128xf32, #tpu.memory_space<vmem>>, vector<1x128xf32>
    %12 = vector.broadcast %11 : vector<1x128xf32> to vector<8x128xf32>
    %13 = arith.addf %10, %12 : vector<8x128xf32>
    %cst_11 = arith.constant 0.000000e+00 : f32
    %14 = vector.broadcast %cst_11 : f32 to vector<8x128xf32>
    %15 = arith.maximumf %13, %14 : vector<8x128xf32>
    %16 = arith.truncf %15 : vector<8x128xf32> to vector<8x128xbf16>
    %c0_12 = arith.constant 0 : index
    %c0_13 = arith.constant 0 : index
    %17 = vector.load %arg6[%c0_12, %c0_13] : memref<128x128xbf16, #tpu.memory_space<vmem>>, vector<128x128xbf16>
    %cst_14 = arith.constant dense<0.000000e+00> : vector<8x128xf32>
    %18 = tpu.matmul %16, %17, %cst_14 {dimension_numbers = #tpu.dot_dimension_numbers<[1], [0], [0], [1], [0, 0, 1, 1], [], []>} : vector<8x128xbf16>, vector<128x128xbf16>, vector<8x128xf32> -> vector<8x128xf32>
    %c0_15 = arith.constant 0 : index
    %c0_16 = arith.constant 0 : index
    %19 = vector.load %arg7[%c0_15, %c0_16] : memref<1x128xf32, #tpu.memory_space<vmem>>, vector<1x128xf32>
    %20 = vector.broadcast %19 : vector<1x128xf32> to vector<8x128xf32>
    %21 = arith.addf %18, %20 : vector<8x128xf32>
    %cst_17 = arith.constant 0.000000e+00 : f32
    %22 = vector.broadcast %cst_17 : f32 to vector<8x128xf32>
    %23 = arith.maximumf %21, %22 : vector<8x128xf32>
    %24 = arith.truncf %23 : vector<8x128xf32> to vector<8x128xbf16>
    %c0_18 = arith.constant 0 : index
    %c0_19 = arith.constant 0 : index
    %25 = vector.load %arg8[%c0_18, %c0_19] : memref<128x128xbf16, #tpu.memory_space<vmem>>, vector<128x128xbf16>
    %cst_20 = arith.constant dense<0.000000e+00> : vector<8x128xf32>
    %26 = tpu.matmul %24, %25, %cst_20 {dimension_numbers = #tpu.dot_dimension_numbers<[1], [0], [0], [1], [0, 0, 1, 1], [], []>} : vector<8x128xbf16>, vector<128x128xbf16>, vector<8x128xf32> -> vector<8x128xf32>
    %c0_21 = arith.constant 0 : index
    %c0_22 = arith.constant 0 : index
    %27 = vector.load %arg9[%c0_21, %c0_22] : memref<1x128xf32, #tpu.memory_space<vmem>>, vector<1x128xf32>
    %28 = vector.broadcast %27 : vector<1x128xf32> to vector<8x128xf32>
    %29 = arith.addf %26, %28 : vector<8x128xf32>
    %cst_23 = arith.constant 0.000000e+00 : f32
    %30 = vector.broadcast %cst_23 : f32 to vector<8x128xf32>
    %31 = arith.maximumf %29, %30 : vector<8x128xf32>
    %32 = arith.truncf %31 : vector<8x128xf32> to vector<8x128xbf16>
    %c0_24 = arith.constant 0 : index
    %c0_25 = arith.constant 0 : index
    %33 = vector.load %arg10[%c0_24, %c0_25] : memref<128x128xbf16, #tpu.memory_space<vmem>>, vector<128x128xbf16>
    %cst_26 = arith.constant dense<0.000000e+00> : vector<8x128xf32>
    %34 = tpu.matmul %32, %33, %cst_26 {dimension_numbers = #tpu.dot_dimension_numbers<[1], [0], [0], [1], [0, 0, 1, 1], [], []>} : vector<8x128xbf16>, vector<128x128xbf16>, vector<8x128xf32> -> vector<8x128xf32>
    %c0_27 = arith.constant 0 : index
    %c0_28 = arith.constant 0 : index
    %35 = vector.load %arg11[%c0_27, %c0_28] : memref<1x128xf32, #tpu.memory_space<vmem>>, vector<1x128xf32>
    %36 = vector.broadcast %35 : vector<1x128xf32> to vector<8x128xf32>
    %37 = arith.addf %34, %36 : vector<8x128xf32>
    %c0_29 = arith.constant 0 : index
    %c0_30 = arith.constant 0 : index
    %38 = vector.load %arg12[%c0_29, %c0_30] : memref<8x128xf32, #tpu.memory_space<vmem>>, vector<8x128xf32>
    tpu.vector_store %arg12[%c0_29, %c0_30], %37 {strides = array<i32>} : memref<8x128xf32, #tpu.memory_space<vmem>>, vector<8x128xf32>,
    return
  }
  func.func @transform_0(%arg0: i32) -> (i32, i32) {
    %c0_i32 = arith.constant 0 : i32
    %c0_i32_0 = arith.constant 0 : i32
    return %arg0, %c0_i32 : i32, i32
  }
  func.func @transform_1(%arg0: i32) -> (i32, i32) {
    %c0_i32 = arith.constant 0 : i32
    %c0_i32_0 = arith.constant 0 : i32
    %c0_i32_1 = arith.constant 0 : i32
    return %c0_i32, %c0_i32_0 : i32, i32
  }
  func.func @transform_2(%arg0: i32) -> (i32, i32) {
    %c0_i32 = arith.constant 0 : i32
    %c0_i32_0 = arith.constant 0 : i32
    %c0_i32_1 = arith.constant 0 : i32
    return %c0_i32, %c0_i32_0 : i32, i32
  }
  func.func @transform_3(%arg0: i32) -> (i32, i32) {
    %c0_i32 = arith.constant 0 : i32
    %c0_i32_0 = arith.constant 0 : i32
    %c0_i32_1 = arith.constant 0 : i32
    return %c0_i32, %c0_i32_0 : i32, i32
  }
  func.func @transform_4(%arg0: i32) -> (i32, i32) {
    %c0_i32 = arith.constant 0 : i32
    %c0_i32_0 = arith.constant 0 : i32
    %c0_i32_1 = arith.constant 0 : i32
    return %c0_i32, %c0_i32_0 : i32, i32
  }
  func.func @transform_5(%arg0: i32) -> (i32, i32) {
    %c0_i32 = arith.constant 0 : i32
    %c0_i32_0 = arith.constant 0 : i32
    %c0_i32_1 = arith.constant 0 : i32
    return %c0_i32, %c0_i32_0 : i32, i32
  }
  func.func @transform_6(%arg0: i32) -> (i32, i32) {
    %c0_i32 = arith.constant 0 : i32
    %c0_i32_0 = arith.constant 0 : i32
    %c0_i32_1 = arith.constant 0 : i32
    return %c0_i32, %c0_i32_0 : i32, i32
  }
  func.func @transform_7(%arg0: i32) -> (i32, i32) {
    %c0_i32 = arith.constant 0 : i32
    %c0_i32_0 = arith.constant 0 : i32
    %c0_i32_1 = arith.constant 0 : i32
    return %c0_i32, %c0_i32_0 : i32, i32
  }
  func.func @transform_8(%arg0: i32) -> (i32, i32) {
    %c0_i32 = arith.constant 0 : i32
    %c0_i32_0 = arith.constant 0 : i32
    %c0_i32_1 = arith.constant 0 : i32
    return %c0_i32, %c0_i32_0 : i32, i32
  }
  func.func @transform_9(%arg0: i32) -> (i32, i32) {
    %c0_i32 = arith.constant 0 : i32
    %c0_i32_0 = arith.constant 0 : i32
    %c0_i32_1 = arith.constant 0 : i32
    return %c0_i32, %c0_i32_0 : i32, i32
  }
  func.func @transform_10(%arg0: i32) -> (i32, i32) {
    %c0_i32 = arith.constant 0 : i32
    %c0_i32_0 = arith.constant 0 : i32
    %c0_i32_1 = arith.constant 0 : i32
    return %c0_i32, %c0_i32_0 : i32, i32
  }
  func.func @transform_11(%arg0: i32) -> (i32, i32) {
    %c0_i32 = arith.constant 0 : i32
    %c0_i32_0 = arith.constant 0 : i32
    return %arg0, %c0_i32 : i32, i32
  }
}

</mosaic_0001>

<bundles_post_ra>
// kernel: tpu_custom_call.1
= control target key start
LH: loop header
LB: loop body
LE: loop exit
PB: predicated region body
PF: predicated region fallthrough
CT: control target
= control target key end

     0   :  { %16 = vsyncpa [#allocation3], 0  ;;  %s1343_s0 = inlined_call_operand.hbm [shape: bf16[8,128], index: 0, kind: input, shape index: {}]   ;;  %s1344_s1 = inlined_call_operand.hbm [shape: bf16[128,128], index: 1, kind: input, shape index: {}]   ;;  %s1345_s2 = inlined_call_operand.vmem [shape: f32[1,128], index: 2, kind: input, shape index: {}]   ;;  %s1346_s3 = inlined_call_operand.hbm [shape: bf16[128,128], index: 3, kind: input, shape index: {}]   ;;  %s1347_s4 = inlined_call_operand.vmem [shape: f32[1,128], index: 4, kind: input, shape index: {}]   ;;  %s1348_s5 = inlined_call_operand.hbm [shape: bf16[128,128], index: 5, kind: input, shape index: {}]   ;;  %s1349_s6 = inlined_call_operand.vmem [shape: f32[1,128], index: 6, kind: input, shape index: {}]   ;;  %s1350_s7 = inlined_call_operand.hbm [shape: bf16[128,128], index: 7, kind: input, shape index: {}]   ;;  %s1351_s8 = inlined_call_operand.vmem [shape: f32[1,128], index: 8, kind: input, shape index: {}]   ;;  %s1352_s9 = inlined_call_operand.hbm [shape: bf16[128,128], index: 9, kind: input, shape index: {}]   ;;  %s1353_s10 = inlined_call_operand.vmem [shape: f32[1,128], index: 10, kind: input, shape index: {}]   ;;  %s1354_s11 = inlined_call_operand.hbm [shape: f32[8,128], index: 11, kind: output, shape index: {}]  }
   0x1   :  { %17 = vsyncpa [#allocation6], 0 }
   0x2   :  { %18 = vsyncpa [#allocation9], 0 }
   0x3   :  { %19 = vsyncpa [#allocation12], 0 }
   0x4   :  { %20 = vsyncpa [#allocation4], 0  ;;  %s1108_s17 = smov [#allocation5]   ;;  %s944_s21 = scalar_lea.hbm %s1344_s1, 1024 }
   0x5   :  { %s36_s18 = sshll.u32 %s1108_s17, 4  ;;  %p945_p0 = scmp.ne.s32.totalorder %s1344_s1, %s944_s21  ;;  %s37_s18 = int_to_ptr.vmem [resolvable:$true] %s36_s18 }
   0x6   :  { %p948_p1 = scmp.lt.u32.totalorder %s944_s21, %s1344_s1 }
   0x8   :  { %p950_p2 = pnand %p948_p1, %p945_p0 }
   0xa   :  { %953 = shalt.err (!%p950_p2)
}
   0xb   :  { %s954_s26 = scalar_lea.vmem %s37_s18, 1024  ;;  %p959_p4 = scmp.lt.s32.totalorder %s37_s18, %s37_s18 }
   0xc   :  { %p955_p3 = scmp.ne.s32.totalorder %s37_s18, %s954_s26  ;;  %p960_p5 = scmp.lt.s32.totalorder %s954_s26, %s954_s26 }
   0xe   :  { %p961_p6 = por %p960_p5, %p959_p4 }
  0x10   :  { %p962_p7 = pnand %p961_p6, %p955_p3 }
  0x12   :  { %965 = shalt.err (!%p962_p7)
}
  0x13   :  { %s1109_s27 = smov 64   ;;  %s1110_s28 = smov 4  }
  0x14   :  { %42 = dma.hbm_to_vmem [thread:$0]  %s1344_s1, 1024, %s37_s18, [#allocation6], %s1109_s27, %s1109_s27, %s1110_s28  }
  0x15   :  { %s1111_s12 = smov [#allocation8]   ;;  %s1112_s14 = smov [#allocation2]  }
  0x16   :  { %s64_s13 = sshll.u32 %s1111_s12, 4  ;;  %s27_s15 = sshll.u32 %s1112_s14, 4  ;;  %s65_s13 = int_to_ptr.vmem [resolvable:$true] %s64_s13  ;;  %s28_s15 = int_to_ptr.vmem [resolvable:$true] %s27_s15 }
  0x17   :  { %s966_s19 = scalar_lea.hbm %s1348_s5, 1024 }
  0x18   :  { %p967_p8 = scmp.ne.s32.totalorder %s1348_s5, %s966_s19  ;;  %p970_p9 = scmp.lt.u32.totalorder %s966_s19, %s1348_s5 }
  0x1a   :  { %p972_p10 = pnand %p970_p9, %p967_p8 }
  0x1c   :  { %975 = shalt.err (!%p972_p10)
}
  0x1d   :  { %s976_s1 = scalar_lea.vmem %s65_s13, 1024  ;;  %p981_p12 = scmp.lt.s32.totalorder %s65_s13, %s65_s13 }
  0x1e   :  { %p977_p11 = scmp.ne.s32.totalorder %s65_s13, %s976_s1  ;;  %p982_p13 = scmp.lt.s32.totalorder %s976_s1, %s976_s1 }
  0x20   :  { %p983_p0 = por %p982_p13, %p981_p12 }
  0x22   :  { %p984_p1 = pnand %p983_p0, %p977_p11 }
  0x24   :  { %987 = shalt.err (!%p984_p1)
}
  0x25   :  { %70 = dma.hbm_to_vmem [thread:$0]  %s1348_s5, 1024, %s65_s13, [#allocation9], %s1109_s27, %s1109_s27, %s1110_s28  }
  0x26   :  { %s988_s29 = scalar_lea.hbm %s1343_s0, 64 }
  0x27   :  { %p989_p2 = scmp.ne.s32.totalorder %s1343_s0, %s988_s29  ;;  %p992_p3 = scmp.lt.u32.totalorder %s988_s29, %s1343_s0 }
  0x29   :  { %p994_p4 = pnand %p992_p3, %p989_p2 }
  0x2b   :  { %997 = shalt.err (!%p994_p4)
}
  0x2c   :  { %s998_s17 = scalar_lea.vmem %s28_s15, 64  ;;  %p1003_p6 = scmp.lt.s32.totalorder %s28_s15, %s28_s15 }
  0x2d   :  { %p999_p5 = scmp.ne.s32.totalorder %s28_s15, %s998_s17  ;;  %p1004_p7 = scmp.lt.s32.totalorder %s998_s17, %s998_s17 }
  0x2f   :  { %p1005_p8 = por %p1004_p7, %p1003_p6 }
  0x31   :  { %p1006_p9 = pnand %p1005_p8, %p999_p5 }
  0x33   :  { %1009 = shalt.err (!%p1006_p9)
}
  0x34   :  { %30 = dma.hbm_to_vmem [thread:$0]  %s1343_s0, 64, %s28_s15, [#allocation3]  }
  0x35   :  { %s1113_s19 = smov [#allocation7]   ;;  %s1114_s21 = smov [#allocation10]  }
  0x36   :  { %s50_s20 = sshll.u32 %s1113_s19, 4  ;;  %s78_s22 = sshll.u32 %s1114_s21, 4  ;;  %s51_s20 = int_to_ptr.vmem [resolvable:$true] %s50_s20  ;;  %s79_s22 = int_to_ptr.vmem [resolvable:$true] %s78_s22 }
  0x37   :  { %s1010_s18 = scalar_lea.hbm %s1346_s3, 1024 }
  0x38   :  { %p1011_p10 = scmp.ne.s32.totalorder %s1346_s3, %s1010_s18  ;;  %p1014_p11 = scmp.lt.u32.totalorder %s1010_s18, %s1346_s3 }
  0x3a   :  { %p1016_p12 = pnand %p1014_p11, %p1011_p10 }
  0x3c   :  { %1019 = shalt.err (!%p1016_p12)
}
  0x3d   :  { %s1020_s0 = scalar_lea.vmem %s51_s20, 1024  ;;  %p1025_p0 = scmp.lt.s32.totalorder %s51_s20, %s51_s20 }
  0x3e   :  { %p1021_p13 = scmp.ne.s32.totalorder %s51_s20, %s1020_s0  ;;  %p1026_p1 = scmp.lt.s32.totalorder %s1020_s0, %s1020_s0 }
  0x40   :  { %p1027_p2 = por %p1026_p1, %p1025_p0 }
  0x42   :  { %p1028_p3 = pnand %p1027_p2, %p1021_p13 }
  0x44   :  { %1031 = shalt.err (!%p1028_p3)
}
  0x45   :  { %56 = dma.hbm_to_vmem [thread:$0]  %s1346_s3, 1024, %s51_s20, [#allocation6], %s1109_s27, %s1109_s27, %s1110_s28  }
  0x46   :  { %s1032_s16 = scalar_lea.hbm %s1350_s7, 1024 }
  0x47   :  { %p1033_p4 = scmp.ne.s32.totalorder %s1350_s7, %s1032_s16  ;;  %p1036_p5 = scmp.lt.u32.totalorder %s1032_s16, %s1350_s7 }
  0x49   :  { %p1038_p6 = pnand %p1036_p5, %p1033_p4 }
  0x4b   :  { %1041 = shalt.err (!%p1038_p6)
}
  0x4c   :  { %s1042_s21 = scalar_lea.vmem %s79_s22, 1024  ;;  %p1047_p8 = scmp.lt.s32.totalorder %s79_s22, %s79_s22 }
  0x4d   :  { %p1043_p7 = scmp.ne.s32.totalorder %s79_s22, %s1042_s21  ;;  %p1048_p9 = scmp.lt.s32.totalorder %s1042_s21, %s1042_s21 }
  0x4f   :  { %p1049_p10 = por %p1048_p9, %p1047_p8 }
  0x51   :  { %p1050_p11 = pnand %p1049_p10, %p1043_p7 }
  0x53   :  { %1053 = shalt.err (!%p1050_p11)
}
  0x54   :  { %84 = dma.hbm_to_vmem [thread:$0]  %s1350_s7, 1024, %s79_s22, [#allocation9], %s1109_s27, %s1109_s27, %s1110_s28  }
  0x55   :  { %s1115_s23 = smov [#allocation11]   ;;  %s1054_s25 = scalar_lea.hbm %s1352_s9, 1024 }
  0x56   :  { %s92_s1 = sshll.u32 %s1115_s23, 4  ;;  %p1055_p12 = scmp.ne.s32.totalorder %s1352_s9, %s1054_s25  ;;  %s93_s1 = int_to_ptr.vmem [resolvable:$true] %s92_s1 }
  0x57   :  { %p1058_p13 = scmp.lt.u32.totalorder %s1054_s25, %s1352_s9 }
  0x59   :  { %p1060_p0 = pnand %p1058_p13, %p1055_p12 }
  0x5b   :  { %1063 = shalt.err (!%p1060_p0)
}
  0x5c   :  { %s1064_s30 = scalar_lea.vmem %s93_s1, 1024  ;;  %p1069_p2 = scmp.lt.s32.totalorder %s93_s1, %s93_s1 }
  0x5d   :  { %p1065_p1 = scmp.ne.s32.totalorder %s93_s1, %s1064_s30  ;;  %p1070_p3 = scmp.lt.s32.totalorder %s1064_s30, %s1064_s30 }
  0x5f   :  { %p1071_p4 = por %p1070_p3, %p1069_p2 }
  0x61   :  { %p1072_p5 = pnand %p1071_p4, %p1065_p1 }
  0x63   :  { %1075 = shalt.err (!%p1072_p5)
}
  0x64   :  { %98 = dma.hbm_to_vmem [thread:$0]  %s1352_s9, 1024, %s93_s1, [#allocation12], %s1109_s27, %s1109_s27, %s1110_s28  }
  0x65   :  { %1098 = dma.done.wait [#allocation3], 64  }
  0x66   :  { %1099 = vsyncadd [#allocation3], 4294967232 }
  0x67   :  { %1100 = dma.done.wait [#allocation6], 2048  }
  0x68   :  { %1101 = vsyncadd [#allocation6], 4294965248 }
  0x69   :  { %1102 = dma.done.wait [#allocation9], 2048  }
  0x6a   :  { %1103 = vsyncadd [#allocation9], 4294965248 }
  0x6b   :  { %1104 = dma.done.wait [#allocation12], 1024  }
  0x6c   :  { %1105 = vsyncadd [#allocation12], 4294966272  ;;  %v1116_v0 = vmov 0.0   ;;  %vm1117_vm0 = vmmov 0   ;;  %v904_v1 = vld [vmem:[#allocation5] sm:$0xff]   ;;  %v905_v2 = vld [vmem:[#allocation5 + $0x8] sm:$0xff]  }
  0x6d   :  { %793 = vmatprep.subr.bf16.mxu0 %v1116_v0  ;;  %809 = vmatprep.mubr.msk.bf16.mxu0 %vm1117_vm0, %v1116_v0  ;;  %v906_v3 = vld [vmem:[#allocation5 + $0x10] sm:$0xff]   ;;  %v912_v4 = vld [vmem:[#allocation7] sm:$0xff]   ;;  %v907_v5 = vld [vmem:[#allocation5 + $0x18] sm:$0xff]   ;;  %s1118_s5 = smov [#allocation13]  }
  0x6e   :  { %813 = vmatprep.subr.bf16.mxu1 %v1116_v0  ;;  %829 = vmatprep.mubr.msk.bf16.mxu1 %vm1117_vm0, %v1116_v0  ;;  %v913_v6 = vld [vmem:[#allocation7 + $0x8] sm:$0xff]   ;;  %v908_v7 = vld [vmem:[#allocation5 + $0x20] sm:$0xff]   ;;  %v914_v8 = vld [vmem:[#allocation7 + $0x10] sm:$0xff]   ;;  %s691_s13 = sshll.u32 %s1118_s5, 4  ;;  %s692_s13 = int_to_ptr.vmem [resolvable:$true] %s691_s13 }
  0x6f   :  { %794 = vmatpush3.bf16.msra.mxu0 %v904_v1  ;;  %814 = vmatpush3.bf16.msra.mxu1 %v912_v4  ;;  %v909_v9 = vld [vmem:[#allocation5 + $0x28] sm:$0xff]   ;;  %v915_v10 = vld [vmem:[#allocation7 + $0x18] sm:$0xff]   ;;  %v910_v11 = vld [vmem:[#allocation5 + $0x30] sm:$0xff]   ;;  %p1081_p7 = scmp.lt.s32.totalorder %s692_s13, %s692_s13 }
  0x70   :  { %795 = vmatprep.subr.bf16.mxu0 %v1116_v0  ;;  %815 = vmatprep.subr.bf16.mxu1 %v1116_v0  ;;  %v916_v12 = vld [vmem:[#allocation7 + $0x20] sm:$0xff]   ;;  %v911_v13 = vld [vmem:[#allocation5 + $0x38] sm:$0xff]   ;;  %v917_v14 = vld [vmem:[#allocation7 + $0x28] sm:$0xff]  }
  0x71   :  { %v120_v15 = vld [vmem:[#allocation2] sm:$0xf]  ;;  %v918_v16 = vld [vmem:[#allocation7 + $0x30] sm:$0xff]   ;;  %v920_v18 = vld [vmem:[#allocation8] sm:$0xff]  }
  0x72   :  { %v919_v17 = vld [vmem:[#allocation7 + $0x38] sm:$0xff]   ;;  %v921_v19 = vld [vmem:[#allocation8 + $0x8] sm:$0xff]   ;;  %v922_v20 = vld [vmem:[#allocation8 + $0x10] sm:$0xff]  }
  0x73   :  { %796 = vmatpush3.bf16.msra.mxu0 %v905_v2  ;;  %816 = vmatpush3.bf16.msra.mxu1 %v913_v6  ;;  %v923_v21 = vld [vmem:[#allocation8 + $0x18] sm:$0xff]   ;;  %v924_v22 = vld [vmem:[#allocation8 + $0x20] sm:$0xff]   ;;  %v925_v23 = vld [vmem:[#allocation8 + $0x28] sm:$0xff]  }
  0x74   :  { %797 = vmatprep.subr.bf16.mxu0 %v1116_v0  ;;  %817 = vmatprep.subr.bf16.mxu1 %v1116_v0  ;;  %v703_v24 = vld [vmem:[%s1345_s2] ss:$0 sm:$0xff]  ;;  %v926_v32 = vld [vmem:[#allocation8 + $0x30] sm:$0xff]   ;;  %v928_v34 = vld [vmem:[#allocation10] sm:$0xff]  }
  0x75   :  { %v927_v33 = vld [vmem:[#allocation8 + $0x38] sm:$0xff]   ;;  %v929_v35 = vld [vmem:[#allocation10 + $0x8] sm:$0xff]   ;;  %v930_v36 = vld [vmem:[#allocation10 + $0x10] sm:$0xff]  }
  0x76   :  { %v931_v37 = vld [vmem:[#allocation10 + $0x18] sm:$0xff]   ;;  %v932_v38 = vld [vmem:[#allocation10 + $0x20] sm:$0xff]   ;;  %v933_v39 = vld [vmem:[#allocation10 + $0x28] sm:$0xff]  }
  0x77   :  { %798 = vmatpush3.bf16.msra.mxu0 %v906_v3  ;;  %818 = vmatpush3.bf16.msra.mxu1 %v914_v8  ;;  %v712_v40 = vld [vmem:[%s1347_s4] ss:$0 sm:$0xff]  ;;  %v934_v48 = vld [vmem:[#allocation10 + $0x30] sm:$0xff]   ;;  %v936_v50 = vld [vmem:[#allocation11] sm:$0xff]  }
  0x78   :  { %799 = vmatprep.subr.bf16.mxu0 %v1116_v0  ;;  %819 = vmatprep.subr.bf16.mxu1 %v1116_v0  ;;  %v935_v49 = vld [vmem:[#allocation10 + $0x38] sm:$0xff]   ;;  %v937_v51 = vld [vmem:[#allocation11 + $0x8] sm:$0xff]   ;;  %v938_v52 = vld [vmem:[#allocation11 + $0x10] sm:$0xff]  }
  0x79   :  { %v939_v53 = vld [vmem:[#allocation11 + $0x18] sm:$0xff]   ;;  %v940_v54 = vld [vmem:[#allocation11 + $0x20] sm:$0xff]   ;;  %v941_v55 = vld [vmem:[#allocation11 + $0x28] sm:$0xff]  }
  0x7a   :  { %v721_v56 = vld [vmem:[%s1349_s6] ss:$0 sm:$0xff]  ;;  %v942_v1 = vld [vmem:[#allocation11 + $0x30] sm:$0xff]  }
  0x7b   :  { %800 = vmatpush3.bf16.msra.mxu0 %v907_v5  ;;  %820 = vmatpush3.bf16.msra.mxu1 %v915_v10  ;;  %v943_v2 = vld [vmem:[#allocation11 + $0x38] sm:$0xff]  }
  0x7c   :  { %801 = vmatprep.subr.bf16.mxu0 %v1116_v0  ;;  %821 = vmatprep.subr.bf16.mxu1 %v1116_v0  ;;  %v730_v3 = vld [vmem:[%s1351_s8] ss:$0 sm:$0xff]  ;;  %s1076_s8 = scalar_lea.vmem %s692_s13, 128 }
  0x7d   :  { %p1077_p6 = scmp.ne.s32.totalorder %s692_s13, %s1076_s8  ;;  %p1082_p8 = scmp.lt.s32.totalorder %s1076_s8, %s1076_s8 }
  0x7f   :  { %802 = vmatpush3.bf16.msra.mxu0 %v908_v7  ;;  %822 = vmatpush3.bf16.msra.mxu1 %v916_v12  ;;  %p1083_p9 = por %p1082_p8, %p1081_p7 }
  0x80   :  { %803 = vmatprep.subr.bf16.mxu0 %v1116_v0  ;;  %823 = vmatprep.subr.bf16.mxu1 %v1116_v0 }
  0x81   :  { %p1084_p10 = pnand %p1083_p9, %p1077_p6 }
  0x83   :  { %804 = vmatpush3.bf16.msra.mxu0 %v909_v9  ;;  %824 = vmatpush3.bf16.msra.mxu1 %v917_v14 }
  0x84   :  { %805 = vmatprep.subr.bf16.mxu0 %v1116_v0  ;;  %825 = vmatprep.subr.bf16.mxu1 %v1116_v0 }
  0x87   :  { %806 = vmatpush3.bf16.msra.mxu0 %v910_v11  ;;  %826 = vmatpush3.bf16.msra.mxu1 %v918_v16  ;;  %v739_v11 = vld [vmem:[%s1353_s10] ss:$0 sm:$0xff] }
  0x88   :  { %807 = vmatprep.subr.bf16.mxu0 %v1116_v0  ;;  %827 = vmatprep.subr.bf16.mxu1 %v1116_v0 }
  0x8b   :  { %808 = vmatpush3.bf16.msra.mxu0 %v911_v13  ;;  %828 = vmatpush3.bf16.msra.mxu1 %v919_v17 }
  0x8c   :  { %833 = vmatprep.subr.bf16.mxu0 %v1116_v0  ;;  %853 = vmatprep.subr.bf16.mxu1 %v1116_v0 }
  0x8e   :  { %810 = vmatmul.mubr.bf16.vlgmr.msra.gmra.mrb[0].mxu0 %v120_v15 }
  0x8f   :  { %849 = vmatprep.mubr.msk.bf16.mxu0 %vm1117_vm0, %v1116_v0  ;;  %834 = vmatpush3.bf16.msra.mxu0 %v920_v18 }
  0x90   :  { %835 = vmatprep.subr.bf16.mxu0 %v1116_v0 }
  0x93   :  { %836 = vmatpush3.bf16.msra.mxu0 %v921_v19 }
  0x94   :  { %837 = vmatprep.subr.bf16.mxu0 %v1116_v0 }
  0x97   :  { %838 = vmatpush3.bf16.msra.mxu0 %v922_v20 }
  0x98   :  { %839 = vmatprep.subr.bf16.mxu0 %v1116_v0 }
  0x9b   :  { %840 = vmatpush3.bf16.msra.mxu0 %v923_v21 }
  0x9c   :  { %841 = vmatprep.subr.bf16.mxu0 %v1116_v0 }
  0x9f   :  { %842 = vmatpush3.bf16.msra.mxu0 %v924_v22 }
  0xa0   :  { %843 = vmatprep.subr.bf16.mxu0 %v1116_v0 }
  0xa3   :  { %844 = vmatpush3.bf16.msra.mxu0 %v925_v23 }
  0xa4   :  { %845 = vmatprep.subr.bf16.mxu0 %v1116_v0 }
  0xa7   :  { %846 = vmatpush3.bf16.msra.mxu0 %v926_v32 }
  0xa8   :  { %847 = vmatprep.subr.bf16.mxu0 %v1116_v0 }
  0xab   :  { %848 = vmatpush3.bf16.msra.mxu0 %v927_v33 }
  0xac   :  { %873 = vmatprep.subr.bf16.mxu0 %v1116_v0 }
 0x161   :  { %v226_v25 = vpop.f32.mrb[0].mxu0 }
 0x162   :  { %v227_v26 = vadd.f32 %v703_v24, %v226_v25  ;;  %v811_v27 = vpop.f32.mrb[1].mxu0 }
 0x163   :  { %v229_v28 = vpop.f32.mrb[2].mxu0 }
 0x164   :  { %v232_v29 = vmax.f32 %v227_v26, 0.0  ;;  %v812_v30 = vpop.f32.mrb[3].mxu0 }
 0x166   :  { %v233_v31 = vpack.c.bf16 %v232_v29, %v232_v29 }
 0x168   :  { %830 = vmatmul.mubr.bf16.vlgmr.msra.gmra.mrb[0].mxu1 %v233_v31 }
 0x169   :  { %869 = vmatprep.mubr.msk.bf16.mxu1 %vm1117_vm0, %v1116_v0  ;;  %854 = vmatpush3.bf16.msra.mxu1 %v928_v34 }
 0x16a   :  { %855 = vmatprep.subr.bf16.mxu1 %v1116_v0 }
 0x16d   :  { %856 = vmatpush3.bf16.msra.mxu1 %v929_v35 }
 0x16e   :  { %857 = vmatprep.subr.bf16.mxu1 %v1116_v0 }
 0x171   :  { %858 = vmatpush3.bf16.msra.mxu1 %v930_v36 }
 0x172   :  { %859 = vmatprep.subr.bf16.mxu1 %v1116_v0 }
 0x175   :  { %860 = vmatpush3.bf16.msra.mxu1 %v931_v37 }
 0x176   :  { %861 = vmatprep.subr.bf16.mxu1 %v1116_v0 }
 0x179   :  { %862 = vmatpush3.bf16.msra.mxu1 %v932_v38 }
 0x17a   :  { %863 = vmatprep.subr.bf16.mxu1 %v1116_v0 }
 0x17d   :  { %864 = vmatpush3.bf16.msra.mxu1 %v933_v39 }
 0x17e   :  { %865 = vmatprep.subr.bf16.mxu1 %v1116_v0 }
 0x181   :  { %866 = vmatpush3.bf16.msra.mxu1 %v934_v48 }
 0x182   :  { %867 = vmatprep.subr.bf16.mxu1 %v1116_v0 }
 0x185   :  { %868 = vmatpush3.bf16.msra.mxu1 %v935_v49 }
 0x23b   :  { %v339_v41 = vpop.f32.mrb[0].mxu1 }
 0x23c   :  { %v340_v42 = vadd.f32 %v712_v40, %v339_v41  ;;  %v831_v43 = vpop.f32.mrb[1].mxu1 }
 0x23d   :  { %v342_v44 = vpop.f32.mrb[2].mxu1 }
 0x23e   :  { %v345_v45 = vmax.f32 %v340_v42, 0.0  ;;  %v832_v46 = vpop.f32.mrb[3].mxu1 }
 0x240   :  { %v346_v47 = vpack.c.bf16 %v345_v45, %v345_v45 }
 0x242   :  { %850 = vmatmul.mubr.bf16.vlgmr.msra.gmra.mrb[4].mxu0 %v346_v47 }
 0x243   :  { %889 = vmatprep.mubr.msk.bf16.mxu0 %vm1117_vm0, %v1116_v0  ;;  %874 = vmatpush3.bf16.msra.mxu0 %v936_v50 }
 0x244   :  { %875 = vmatprep.subr.bf16.mxu0 %v1116_v0 }
 0x247   :  { %876 = vmatpush3.bf16.msra.mxu0 %v937_v51 }
 0x248   :  { %877 = vmatprep.subr.bf16.mxu0 %v1116_v0 }
 0x24b   :  { %878 = vmatpush3.bf16.msra.mxu0 %v938_v52 }
 0x24c   :  { %879 = vmatprep.subr.bf16.mxu0 %v1116_v0 }
 0x24f   :  { %880 = vmatpush3.bf16.msra.mxu0 %v939_v53 }
 0x250   :  { %881 = vmatprep.subr.bf16.mxu0 %v1116_v0 }
 0x253   :  { %882 = vmatpush3.bf16.msra.mxu0 %v940_v54 }
 0x254   :  { %883 = vmatprep.subr.bf16.mxu0 %v1116_v0 }
 0x257   :  { %884 = vmatpush3.bf16.msra.mxu0 %v941_v55 }
 0x258   :  { %885 = vmatprep.subr.bf16.mxu0 %v1116_v0 }
 0x25b   :  { %886 = vmatpush3.bf16.msra.mxu0 %v942_v1 }
 0x25c   :  { %887 = vmatprep.subr.bf16.mxu0 %v1116_v0 }
 0x25f   :  { %888 = vmatpush3.bf16.msra.mxu0 %v943_v2 }
 0x315   :  { %v452_v57 = vpop.f32.mrb[4].mxu0 }
 0x316   :  { %v453_v58 = vadd.f32 %v721_v56, %v452_v57  ;;  %v851_v59 = vpop.f32.mrb[5].mxu0 }
 0x317   :  { %v455_v60 = vpop.f32.mrb[6].mxu0 }
 0x318   :  { %v458_v61 = vmax.f32 %v453_v58, 0.0  ;;  %v852_v62 = vpop.f32.mrb[7].mxu0 }
 0x31a   :  { %v459_v63 = vpack.c.bf16 %v458_v61, %v458_v61 }
 0x31c   :  { %870 = vmatmul.mubr.bf16.vlgmr.msra.gmra.mrb[4].mxu1 %v459_v63 }
 0x3ef   :  { %v565_v4 = vpop.f32.mrb[4].mxu1 }
 0x3f0   :  { %v566_v5 = vadd.f32 %v730_v3, %v565_v4  ;;  %v871_v6 = vpop.f32.mrb[5].mxu1 }
 0x3f1   :  { %v568_v7 = vpop.f32.mrb[6].mxu1 }
 0x3f2   :  { %v571_v8 = vmax.f32 %v566_v5, 0.0  ;;  %v872_v9 = vpop.f32.mrb[7].mxu1 }
 0x3f4   :  { %v572_v10 = vpack.c.bf16 %v571_v8, %v571_v8 }
 0x3f6   :  { %890 = vmatmul.mubr.bf16.vlgmr.msra.gmra.mrb[8].mxu0 %v572_v10 }
 0x4c9   :  { %v678_v0 = vpop.f32.mrb[8].mxu0 }
 0x4ca   :  { %v679_v12 = vadd.f32 %v739_v11, %v678_v0  ;;  %v891_v13 = vpop.f32.mrb[9].mxu0 }
 0x4cb   :  { %v681_v14 = vpop.f32.mrb[10].mxu0 }
 0x4cc   :  { %684 = vst [vmem:[#allocation13] sm:$0xff] %v679_v12  ;;  %v892_v15 = vpop.f32.mrb[11].mxu0 }
 0x4cd   :  { %1087 = shalt.err (!%p1084_p10)
}
 0x4ce   :  { %s1088_s10 = scalar_lea.hbm %s1354_s11, 128 }
 0x4cf   :  { %p1089_p11 = scmp.ne.s32.totalorder %s1354_s11, %s1088_s10  ;;  %p1092_p12 = scmp.lt.u32.totalorder %s1088_s10, %s1354_s11 }
 0x4d1   :  { %p1094_p13 = pnand %p1092_p12, %p1089_p11 }
 0x4d3   :  { %1097 = shalt.err (!%p1094_p13)
}
 0x4d4   :  { %694 = dma.vmem_to_hbm [thread:$0]  %s692_s13, 128, %s1354_s11, [#allocation4]  }
 0x4d5   :  { %1106 = dma.done.wait [#allocation4], 128  }
 0x4d6   :  { %1107 = vsyncadd [#allocation4], 4294967168 }
 0x4d7   :  { %698 = vsyncpa [#allocation3], 1 }
 0x4d8   :  { %699 = vsyncpa [#allocation6], 1 }
 0x4d9   :  { %700 = vsyncpa [#allocation9], 1 }
 0x4da   :  { %701 = vsyncpa [#allocation12], 1 }
 0x4db   :  { %702 = vsyncpa [#allocation4], 1 }

// kernel: tpu_custom_call.1
= control target key start
LH: loop header
LB: loop body
LE: loop exit
PB: predicated region body
PF: predicated region fallthrough
CT: control target
= control target key end

     0   :  { %16 = vsyncpa [#allocation3], 0  ;;  %s1343_s0 = inlined_call_operand.hbm [shape: bf16[8,128], index: 0, kind: input, shape index: {}]   ;;  %s1344_s1 = inlined_call_operand.hbm [shape: bf16[128,128], index: 1, kind: input, shape index: {}]   ;;  %s1345_s2 = inlined_call_operand.vmem [shape: f32[1,128], index: 2, kind: input, shape index: {}]   ;;  %s1346_s3 = inlined_call_operand.hbm [shape: bf16[128,128], index: 3, kind: input, shape index: {}]   ;;  %s1347_s4 = inlined_call_operand.vmem [shape: f32[1,128], index: 4, kind: input, shape index: {}]   ;;  %s1348_s5 = inlined_call_operand.hbm [shape: bf16[128,128], index: 5, kind: input, shape index: {}]   ;;  %s1349_s6 = inlined_call_operand.vmem [shape: f32[1,128], index: 6, kind: input, shape index: {}]   ;;  %s1350_s7 = inlined_call_operand.hbm [shape: bf16[128,128], index: 7, kind: input, shape index: {}]   ;;  %s1351_s8 = inlined_call_operand.vmem [shape: f32[1,128], index: 8, kind: input, shape index: {}]   ;;  %s1352_s9 = inlined_call_operand.hbm [shape: bf16[128,128], index: 9, kind: input, shape index: {}]   ;;  %s1353_s10 = inlined_call_operand.vmem [shape: f32[1,128], index: 10, kind: input, shape index: {}]   ;;  %s1354_s11 = inlined_call_operand.hbm [shape: f32[8,128], index: 11, kind: output, shape index: {}]  }
   0x1   :  { %17 = vsyncpa [#allocation6], 0 }
   0x2   :  { %18 = vsyncpa [#allocation9], 0 }
   0x3   :  { %19 = vsyncpa [#allocation12], 0 }
   0x4   :  { %20 = vsyncpa [#allocation4], 0  ;;  %s1108_s17 = smov [#allocation5]   ;;  %s944_s21 = scalar_lea.hbm %s1344_s1, 1024 }
   0x5   :  { %s36_s18 = sshll.u32 %s1108_s17, 4  ;;  %p945_p0 = scmp.ne.s32.totalorder %s1344_s1, %s944_s21  ;;  %s37_s18 = int_to_ptr.vmem [resolvable:$true] %s36_s18 }
   0x6   :  { %p948_p1 = scmp.lt.u32.totalorder %s944_s21, %s1344_s1 }
   0x8   :  { %p950_p2 = pnand %p948_p1, %p945_p0 }
   0xa   :  { %953 = shalt.err (!%p950_p2)
}
   0xb   :  { %s954_s26 = scalar_lea.vmem %s37_s18, 1024  ;;  %p959_p4 = scmp.lt.s32.totalorder %s37_s18, %s37_s18 }
   0xc   :  { %p955_p3 = scmp.ne.s32.totalorder %s37_s18, %s954_s26  ;;  %p960_p5 = scmp.lt.s32.totalorder %s954_s26, %s954_s26 }
   0xe   :  { %p961_p6 = por %p960_p5, %p959_p4 }
  0x10   :  { %p962_p7 = pnand %p961_p6, %p955_p3 }
  0x12   :  { %965 = shalt.err (!%p962_p7)
}
  0x13   :  { %s1109_s27 = smov 64   ;;  %s1110_s28 = smov 4  }
  0x14   :  { %42 = dma.hbm_to_vmem [thread:$0]  %s1344_s1, 1024, %s37_s18, [#allocation6], %s1109_s27, %s1109_s27, %s1110_s28  }
  0x15   :  { %s1111_s12 = smov [#allocation8]   ;;  %s1112_s14 = smov [#allocation2]  }
  0x16   :  { %s64_s13 = sshll.u32 %s1111_s12, 4  ;;  %s27_s15 = sshll.u32 %s1112_s14, 4  ;;  %s65_s13 = int_to_ptr.vmem [resolvable:$true] %s64_s13  ;;  %s28_s15 = int_to_ptr.vmem [resolvable:$true] %s27_s15 }
  0x17   :  { %s966_s19 = scalar_lea.hbm %s1348_s5, 1024 }
  0x18   :  { %p967_p8 = scmp.ne.s32.totalorder %s1348_s5, %s966_s19  ;;  %p970_p9 = scmp.lt.u32.totalorder %s966_s19, %s1348_s5 }
  0x1a   :  { %p972_p10 = pnand %p970_p9, %p967_p8 }
  0x1c   :  { %975 = shalt.err (!%p972_p10)
}
  0x1d   :  { %s976_s1 = scalar_lea.vmem %s65_s13, 1024  ;;  %p981_p12 = scmp.lt.s32.totalorder %s65_s13, %s65_s13 }
  0x1e   :  { %p977_p11 = scmp.ne.s32.totalorder %s65_s13, %s976_s1  ;;  %p982_p13 = scmp.lt.s32.totalorder %s976_s1, %s976_s1 }
  0x20   :  { %p983_p0 = por %p982_p13, %p981_p12 }
  0x22   :  { %p984_p1 = pnand %p983_p0, %p977_p11 }
  0x24   :  { %987 = shalt.err (!%p984_p1)
}
  0x25   :  { %70 = dma.hbm_to_vmem [thread:$0]  %s1348_s5, 1024, %s65_s13, [#allocation9], %s1109_s27, %s1109_s27, %s1110_s28  }
  0x26   :  { %s988_s29 = scalar_lea.hbm %s1343_s0, 64 }
  0x27   :  { %p989_p2 = scmp.ne.s32.totalorder %s1343_s0, %s988_s29  ;;  %p992_p3 = scmp.lt.u32.totalorder %s988_s29, %s1343_s0 }
  0x29   :  { %p994_p4 = pnand %p992_p3, %p989_p2 }
  0x2b   :  { %997 = shalt.err (!%p994_p4)
}
  0x2c   :  { %s998_s17 = scalar_lea.vmem %s28_s15, 64  ;;  %p1003_p6 = scmp.lt.s32.totalorder %s28_s15, %s28_s15 }
  0x2d   :  { %p999_p5 = scmp.ne.s32.totalorder %s28_s15, %s998_s17  ;;  %p1004_p7 = scmp.lt.s32.totalorder %s998_s17, %s998_s17 }
  0x2f   :  { %p1005_p8 = por %p1004_p7, %p1003_p6 }
  0x31   :  { %p1006_p9 = pnand %p1005_p8, %p999_p5 }
  0x33   :  { %1009 = shalt.err (!%p1006_p9)
}
  0x34   :  { %30 = dma.hbm_to_vmem [thread:$0]  %s1343_s0, 64, %s28_s15, [#allocation3]  }
  0x35   :  { %s1113_s19 = smov [#allocation7]   ;;  %s1114_s21 = smov [#allocation10]  }
  0x36   :  { %s50_s20 = sshll.u32 %s1113_s19, 4  ;;  %s78_s22 = sshll.u32 %s1114_s21, 4  ;;  %s51_s20 = int_to_ptr.vmem [resolvable:$true] %s50_s20  ;;  %s79_s22 = int_to_ptr.vmem [resolvable:$true] %s78_s22 }
  0x37   :  { %s1010_s18 = scalar_lea.hbm %s1346_s3, 1024 }
  0x38   :  { %p1011_p10 = scmp.ne.s32.totalorder %s1346_s3, %s1010_s18  ;;  %p1014_p11 = scmp.lt.u32.totalorder %s1010_s18, %s1346_s3 }
  0x3a   :  { %p1016_p12 = pnand %p1014_p11, %p1011_p10 }
  0x3c   :  { %1019 = shalt.err (!%p1016_p12)
}
  0x3d   :  { %s1020_s0 = scalar_lea.vmem %s51_s20, 1024  ;;  %p1025_p0 = scmp.lt.s32.totalorder %s51_s20, %s51_s20 }
  0x3e   :  { %p1021_p13 = scmp.ne.s32.totalorder %s51_s20, %s1020_s0  ;;  %p1026_p1 = scmp.lt.s32.totalorder %s1020_s0, %s1020_s0 }
  0x40   :  { %p1027_p2 = por %p1026_p1, %p1025_p0 }
  0x42   :  { %p1028_p3 = pnand %p1027_p2, %p1021_p13 }
  0x44   :  { %1031 = shalt.err (!%p1028_p3)
}
  0x45   :  { %56 = dma.hbm_to_vmem [thread:$0]  %s1346_s3, 1024, %s51_s20, [#allocation6], %s1109_s27, %s1109_s27, %s1110_s28  }
  0x46   :  { %s1032_s16 = scalar_lea.hbm %s1350_s7, 1024 }
  0x47   :  { %p1033_p4 = scmp.ne.s32.totalorder %s1350_s7, %s1032_s16  ;;  %p1036_p5 = scmp.lt.u32.totalorder %s1032_s16, %s1350_s7 }
  0x49   :  { %p1038_p6 = pnand %p1036_p5, %p1033_p4 }
  0x4b   :  { %1041 = shalt.err (!%p1038_p6)
}
  0x4c   :  { %s1042_s21 = scalar_lea.vmem %s79_s22, 1024  ;;  %p1047_p8 = scmp.lt.s32.totalorder %s79_s22, %s79_s22 }
  0x4d   :  { %p1043_p7 = scmp.ne.s32.totalorder %s79_s22, %s1042_s21  ;;  %p1048_p9 = scmp.lt.s32.totalorder %s1042_s21, %s1042_s21 }
  0x4f   :  { %p1049_p10 = por %p1048_p9, %p1047_p8 }
  0x51   :  { %p1050_p11 = pnand %p1049_p10, %p1043_p7 }
  0x53   :  { %1053 = shalt.err (!%p1050_p11)
}
  0x54   :  { %84 = dma.hbm_to_vmem [thread:$0]  %s1350_s7, 1024, %s79_s22, [#allocation9], %s1109_s27, %s1109_s27, %s1110_s28  }
  0x55   :  { %s1115_s23 = smov [#allocation11]   ;;  %s1054_s25 = scalar_lea.hbm %s1352_s9, 1024 }
  0x56   :  { %s92_s1 = sshll.u32 %s1115_s23, 4  ;;  %p1055_p12 = scmp.ne.s32.totalorder %s1352_s9, %s1054_s25  ;;  %s93_s1 = int_to_ptr.vmem [resolvable:$true] %s92_s1 }
  0x57   :  { %p1058_p13 = scmp.lt.u32.totalorder %s1054_s25, %s1352_s9 }
  0x59   :  { %p1060_p0 = pnand %p1058_p13, %p1055_p12 }
  0x5b   :  { %1063 = shalt.err (!%p1060_p0)
}
  0x5c   :  { %s1064_s30 = scalar_lea.vmem %s93_s1, 1024  ;;  %p1069_p2 = scmp.lt.s32.totalorder %s93_s1, %s93_s1 }
  0x5d   :  { %p1065_p1 = scmp.ne.s32.totalorder %s93_s1, %s1064_s30  ;;  %p1070_p3 = scmp.lt.s32.totalorder %s1064_s30, %s1064_s30 }
  0x5f   :  { %p1071_p4 = por %p1070_p3, %p1069_p2 }
  0x61   :  { %p1072_p5 = pnand %p1071_p4, %p1065_p1 }
  0x63   :  { %1075 = shalt.err (!%p1072_p5)
}
  0x64   :  { %98 = dma.hbm_to_vmem [thread:$0]  %s1352_s9, 1024, %s93_s1, [#allocation12], %s1109_s27, %s1109_s27, %s1110_s28  }
  0x65   :  { %1098 = dma.done.wait [#allocation3], 64  }
  0x66   :  { %1099 = vsyncadd [#allocation3], 4294967232 }
  0x67   :  { %1100 = dma.done.wait [#allocation6], 2048  }
  0x68   :  { %1101 = vsyncadd [#allocation6], 4294965248 }
  0x69   :  { %1102 = dma.done.wait [#allocation9], 2048  }
  0x6a   :  { %1103 = vsyncadd [#allocation9], 4294965248 }
  0x6b   :  { %1104 = dma.done.wait [#allocation12], 1024  }
  0x6c   :  { %1105 = vsyncadd [#allocation12], 4294966272  ;;  %v1116_v0 = vmov 0.0   ;;  %vm1117_vm0 = vmmov 0   ;;  %v904_v1 = vld [vmem:[#allocation5] sm:$0xff]   ;;  %v905_v2 = vld [vmem:[#allocation5 + $0x8] sm:$0xff]  }
  0x6d   :  { %793 = vmatprep.subr.bf16.mxu0 %v1116_v0  ;;  %809 = vmatprep.mubr.msk.bf16.mxu0 %vm1117_vm0, %v1116_v0  ;;  %v906_v3 = vld [vmem:[#allocation5 + $0x10] sm:$0xff]   ;;  %v912_v4 = vld [vmem:[#allocation7] sm:$0xff]   ;;  %v907_v5 = vld [vmem:[#allocation5 + $0x18] sm:$0xff]   ;;  %s1118_s5 = smov [#allocation13]  }
  0x6e   :  { %813 = vmatprep.subr.bf16.mxu1 %v1116_v0  ;;  %829 = vmatprep.mubr.msk.bf16.mxu1 %vm1117_vm0, %v1116_v0  ;;  %v913_v6 = vld [vmem:[#allocation7 + $0x8] sm:$0xff]   ;;  %v908_v7 = vld [vmem:[#allocation5 + $0x20] sm:$0xff]   ;;  %v914_v8 = vld [vmem:[#allocation7 + $0x10] sm:$0xff]   ;;  %s691_s13 = sshll.u32 %s1118_s5, 4  ;;  %s692_s13 = int_to_ptr.vmem [resolvable:$true] %s691_s13 }
  0x6f   :  { %794 = vmatpush3.bf16.msra.mxu0 %v904_v1  ;;  %814 = vmatpush3.bf16.msra.mxu1 %v912_v4  ;;  %v909_v9 = vld [vmem:[#allocation5 + $0x28] sm:$0xff]   ;;  %v915_v10 = vld [vmem:[#allocation7 + $0x18] sm:$0xff]   ;;  %v910_v11 = vld [vmem:[#allocation5 + $0x30] sm:$0xff]   ;;  %p1081_p7 = scmp.lt.s32.totalorder %s692_s13, %s692_s13 }
  0x70   :  { %795 = vmatprep.subr.bf16.mxu0 %v1116_v0  ;;  %815 = vmatprep.subr.bf16.mxu1 %v1116_v0  ;;  %v916_v12 = vld [vmem:[#allocation7 + $0x20] sm:$0xff]   ;;  %v911_v13 = vld [vmem:[#allocation5 + $0x38] sm:$0xff]   ;;  %v917_v14 = vld [vmem:[#allocation7 + $0x28] sm:$0xff]  }
  0x71   :  { %v120_v15 = vld [vmem:[#allocation2] sm:$0xf]  ;;  %v918_v16 = vld [vmem:[#allocation7 + $0x30] sm:$0xff]   ;;  %v920_v18 = vld [vmem:[#allocation8] sm:$0xff]  }
  0x72   :  { %v919_v17 = vld [vmem:[#allocation7 + $0x38] sm:$0xff]   ;;  %v921_v19 = vld [vmem:[#allocation8 + $0x8] sm:$0xff]   ;;  %v922_v20 = vld [vmem:[#allocation8 + $0x10] sm:$0xff]  }
  0x73   :  { %796 = vmatpush3.bf16.msra.mxu0 %v905_v2  ;;  %816 = vmatpush3.bf16.msra.mxu1 %v913_v6  ;;  %v923_v21 = vld [vmem:[#allocation8 + $0x18] sm:$0xff]   ;;  %v924_v22 = vld [vmem:[#allocation8 + $0x20] sm:$0xff]   ;;  %v925_v23 = vld [vmem:[#allocation8 + $0x28] sm:$0xff]  }
  0x74   :  { %797 = vmatprep.subr.bf16.mxu0 %v1116_v0  ;;  %817 = vmatprep.subr.bf16.mxu1 %v1116_v0  ;;  %v703_v24 = vld [vmem:[%s1345_s2] ss:$0 sm:$0xff]  ;;  %v926_v32 = vld [vmem:[#allocation8 + $0x30] sm:$0xff]   ;;  %v928_v34 = vld [vmem:[#allocation10] sm:$0xff]  }
  0x75   :  { %v927_v33 = vld [vmem:[#allocation8 + $0x38] sm:$0xff]   ;;  %v929_v35 = vld [vmem:[#allocation10 + $0x8] sm:$0xff]   ;;  %v930_v36 = vld [vmem:[#allocation10 + $0x10] sm:$0xff]  }
  0x76   :  { %v931_v37 = vld [vmem:[#allocation10 + $0x18] sm:$0xff]   ;;  %v932_v38 = vld [vmem:[#allocation10 + $0x20] sm:$0xff]   ;;  %v933_v39 = vld [vmem:[#allocation10 + $0x28] sm:$0xff]  }
  0x77   :  { %798 = vmatpush3.bf16.msra.mxu0 %v906_v3  ;;  %818 = vmatpush3.bf16.msra.mxu1 %v914_v8  ;;  %v712_v40 = vld [vmem:[%s1347_s4] ss:$0 sm:$0xff]  ;;  %v934_v48 = vld [vmem:[#allocation10 + $0x30] sm:$0xff]   ;;  %v936_v50 = vld [vmem:[#allocation11] sm:$0xff]  }
  0x78   :  { %799 = vmatprep.subr.bf16.mxu0 %v1116_v0  ;;  %819 = vmatprep.subr.bf16.mxu1 %v1116_v0  ;;  %v935_v49 = vld [vmem:[#allocation10 + $0x38] sm:$0xff]   ;;  %v937_v51 = vld [vmem:[#allocation11 + $0x8] sm:$0xff]   ;;  %v938_v52 = vld [vmem:[#allocation11 + $0x10] sm:$0xff]  }
  0x79   :  { %v939_v53 = vld [vmem:[#allocation11 + $0x18] sm:$0xff]   ;;  %v940_v54 = vld [vmem:[#allocation11 + $0x20] sm:$0xff]   ;;  %v941_v55 = vld [vmem:[#allocation11 + $0x28] sm:$0xff]  }
  0x7a   :  { %v721_v56 = vld [vmem:[%s1349_s6] ss:$0 sm:$0xff]  ;;  %v942_v1 = vld [vmem:[#allocation11 + $0x30] sm:$0xff]  }
  0x7b   :  { %800 = vmatpush3.bf16.msra.mxu0 %v907_v5  ;;  %820 = vmatpush3.bf16.msra.mxu1 %v915_v10  ;;  %v943_v2 = vld [vmem:[#allocation11 + $0x38] sm:$0xff]  }
  0x7c   :  { %801 = vmatprep.subr.bf16.mxu0 %v1116_v0  ;;  %821 = vmatprep.subr.bf16.mxu1 %v1116_v0  ;;  %v730_v3 = vld [vmem:[%s1351_s8] ss:$0 sm:$0xff]  ;;  %s1076_s8 = scalar_lea.vmem %s692_s13, 128 }
  0x7d   :  { %p1077_p6 = scmp.ne.s32.totalorder %s692_s13, %s1076_s8  ;;  %p1082_p8 = scmp.lt.s32.totalorder %s1076_s8, %s1076_s8 }
  0x7f   :  { %802 = vmatpush3.bf16.msra.mxu0 %v908_v7  ;;  %822 = vmatpush3.bf16.msra.mxu1 %v916_v12  ;;  %p1083_p9 = por %p1082_p8, %p1081_p7 }
  0x80   :  { %803 = vmatprep.subr.bf16.mxu0 %v1116_v0  ;;  %823 = vmatprep.subr.bf16.mxu1 %v1116_v0 }
  0x81   :  { %p1084_p10 = pnand %p1083_p9, %p1077_p6 }
  0x83   :  { %804 = vmatpush3.bf16.msra.mxu0 %v909_v9  ;;  %824 = vmatpush3.bf16.msra.mxu1 %v917_v14 }
  0x84   :  { %805 = vmatprep.subr.bf16.mxu0 %v1116_v0  ;;  %825 = vmatprep.subr.bf16.mxu1 %v1116_v0 }
  0x87   :  { %806 = vmatpush3.bf16.msra.mxu0 %v910_v11  ;;  %826 = vmatpush3.bf16.msra.mxu1 %v918_v16  ;;  %v739_v11 = vld [vmem:[%s1353_s10] ss:$0 sm:$0xff] }
  0x88   :  { %807 = vmatprep.subr.bf16.mxu0 %v1116_v0  ;;  %827 = vmatprep.subr.bf16.mxu1 %v1116_v0 }
  0x8b   :  { %808 = vmatpush3.bf16.msra.mxu0 %v911_v13  ;;  %828 = vmatpush3.bf16.msra.mxu1 %v919_v17 }
  0x8c   :  { %833 = vmatprep.subr.bf16.mxu0 %v1116_v0  ;;  %853 = vmatprep.subr.bf16.mxu1 %v1116_v0 }
  0x8e   :  { %810 = vmatmul.mubr.bf16.vlgmr.msra.gmra.mrb[0].mxu0 %v120_v15 }
  0x8f   :  { %849 = vmatprep.mubr.msk.bf16.mxu0 %vm1117_vm0, %v1116_v0  ;;  %834 = vmatpush3.bf16.msra.mxu0 %v920_v18 }
  0x90   :  { %835 = vmatprep.subr.bf16.mxu0 %v1116_v0 }
  0x93   :  { %836 = vmatpush3.bf16.msra.mxu0 %v921_v19 }
  0x94   :  { %837 = vmatprep.subr.bf16.mxu0 %v1116_v0 }
  0x97   :  { %838 = vmatpush3.bf16.msra.mxu0 %v922_v20 }
  0x98   :  { %839 = vmatprep.subr.bf16.mxu0 %v1116_v0 }
  0x9b   :  { %840 = vmatpush3.bf16.msra.mxu0 %v923_v21 }
  0x9c   :  { %841 = vmatprep.subr.bf16.mxu0 %v1116_v0 }
  0x9f   :  { %842 = vmatpush3.bf16.msra.mxu0 %v924_v22 }
  0xa0   :  { %843 = vmatprep.subr.bf16.mxu0 %v1116_v0 }
  0xa3   :  { %844 = vmatpush3.bf16.msra.mxu0 %v925_v23 }
  0xa4   :  { %845 = vmatprep.subr.bf16.mxu0 %v1116_v0 }
  0xa7   :  { %846 = vmatpush3.bf16.msra.mxu0 %v926_v32 }
  0xa8   :  { %847 = vmatprep.subr.bf16.mxu0 %v1116_v0 }
  0xab   :  { %848 = vmatpush3.bf16.msra.mxu0 %v927_v33 }
  0xac   :  { %873 = vmatprep.subr.bf16.mxu0 %v1116_v0 }
 0x161   :  { %v226_v25 = vpop.f32.mrb[0].mxu0 }
 0x162   :  { %v227_v26 = vadd.f32 %v703_v24, %v226_v25  ;;  %v811_v27 = vpop.f32.mrb[1].mxu0 }
 0x163   :  { %v229_v28 = vpop.f32.mrb[2].mxu0 }
 0x164   :  { %v232_v29 = vmax.f32 %v227_v26, 0.0  ;;  %v812_v30 = vpop.f32.mrb[3].mxu0 }
 0x166   :  { %v233_v31 = vpack.c.bf16 %v232_v29, %v232_v29 }
 0x168   :  { %830 = vmatmul.mubr.bf16.vlgmr.msra.gmra.mrb[0].mxu1 %v233_v31 }
 0x169   :  { %869 = vmatprep.mubr.msk.bf16.mxu1 %vm1117_vm0, %v1116_v0  ;;  %854 = vmatpush3.bf16.msra.mxu1 %v928_v34 }
 0x16a   :  { %855 = vmatprep.subr.bf16.mxu1 %v1116_v0 }
 0x16d   :  { %856 = vmatpush3.bf16.msra.mxu1 %v929_v35 }
 0x16e   :  { %857 = vmatprep.subr.bf16.mxu1 %v1116_v0 }
 0x171   :  { %858 = vmatpush3.bf16.msra.mxu1 %v930_v36 }
 0x172   :  { %859 = vmatprep.subr.bf16.mxu1 %v1116_v0 }
 0x175   :  { %860 = vmatpush3.bf16.msra.mxu1 %v931_v37 }
 0x176   :  { %861 = vmatprep.subr.bf16.mxu1 %v1116_v0 }
 0x179   :  { %862 = vmatpush3.bf16.msra.mxu1 %v932_v38 }
 0x17a   :  { %863 = vmatprep.subr.bf16.mxu1 %v1116_v0 }
 0x17d   :  { %864 = vmatpush3.bf16.msra.mxu1 %v933_v39 }
 0x17e   :  { %865 = vmatprep.subr.bf16.mxu1 %v1116_v0 }
 0x181   :  { %866 = vmatpush3.bf16.msra.mxu1 %v934_v48 }
 0x182   :  { %867 = vmatprep.subr.bf16.mxu1 %v1116_v0 }
 0x185   :  { %868 = vmatpush3.bf16.msra.mxu1 %v935_v49 }
 0x23b   :  { %v339_v41 = vpop.f32.mrb[0].mxu1 }
 0x23c   :  { %v340_v42 = vadd.f32 %v712_v40, %v339_v41  ;;  %v831_v43 = vpop.f32.mrb[1].mxu1 }
 0x23d   :  { %v342_v44 = vpop.f32.mrb[2].mxu1 }
 0x23e   :  { %v345_v45 = vmax.f32 %v340_v42, 0.0  ;;  %v832_v46 = vpop.f32.mrb[3].mxu1 }
 0x240   :  { %v346_v47 = vpack.c.bf16 %v345_v45, %v345_v45 }
 0x242   :  { %850 = vmatmul.mubr.bf16.vlgmr.msra.gmra.mrb[4].mxu0 %v346_v47 }
 0x243   :  { %889 = vmatprep.mubr.msk.bf16.mxu0 %vm1117_vm0, %v1116_v0  ;;  %874 = vmatpush3.bf16.msra.mxu0 %v936_v50 }
 0x244   :  { %875 = vmatprep.subr.bf16.mxu0 %v1116_v0 }
 0x247   :  { %876 = vmatpush3.bf16.msra.mxu0 %v937_v51 }
 0x248   :  { %877 = vmatprep.subr.bf16.mxu0 %v1116_v0 }
 0x24b   :  { %878 = vmatpush3.bf16.msra.mxu0 %v938_v52 }
 0x24c   :  { %879 = vmatprep.subr.bf16.mxu0 %v1116_v0 }
 0x24f   :  { %880 = vmatpush3.bf16.msra.mxu0 %v939_v53 }
 0x250   :  { %881 = vmatprep.subr.bf16.mxu0 %v1116_v0 }
 0x253   :  { %882 = vmatpush3.bf16.msra.mxu0 %v940_v54 }
 0x254   :  { %883 = vmatprep.subr.bf16.mxu0 %v1116_v0 }
 0x257   :  { %884 = vmatpush3.bf16.msra.mxu0 %v941_v55 }
 0x258   :  { %885 = vmatprep.subr.bf16.mxu0 %v1116_v0 }
 0x25b   :  { %886 = vmatpush3.bf16.msra.mxu0 %v942_v1 }
 0x25c   :  { %887 = vmatprep.subr.bf16.mxu0 %v1116_v0 }
 0x25f   :  { %888 = vmatpush3.bf16.msra.mxu0 %v943_v2 }
 0x315   :  { %v452_v57 = vpop.f32.mrb[4].mxu0 }
 0x316   :  { %v453_v58 = vadd.f32 %v721_v56, %v452_v57  ;;  %v851_v59 = vpop.f32.mrb[5].mxu0 }
 0x317   :  { %v455_v60 = vpop.f32.mrb[6].mxu0 }
 0x318   :  { %v458_v61 = vmax.f32 %v453_v58, 0.0  ;;  %v852_v62 = vpop.f32.mrb[7].mxu0 }
 0x31a   :  { %v459_v63 = vpack.c.bf16 %v458_v61, %v458_v61 }
 0x31c   :  { %870 = vmatmul.mubr.bf16.vlgmr.msra.gmra.mrb[4].mxu1 %v459_v63 }
 0x3ef   :  { %v565_v4 = vpop.f32.mrb[4].mxu1 }
 0x3f0   :  { %v566_v5 = vadd.f32 %v730_v3, %v565_v4  ;;  %v871_v6 = vpop.f32.mrb[5].mxu1 }
 0x3f1   :  { %v568_v7 = vpop.f32.mrb[6].mxu1 }
 0x3f2   :  { %v571_v8 = vmax.f32 %v566_v5, 0.0  ;;  %v872_v9 = vpop.f32.mrb[7].mxu1 }
 0x3f4   :  { %v572_v10 = vpack.c.bf16 %v571_v8, %v571_v8 }
 0x3f6   :  { %890 = vmatmul.mubr.bf16.vlgmr.msra.gmra.mrb[8].mxu0 %v572_v10 }
 0x4c9   :  { %v678_v0 = vpop.f32.mrb[8].mxu0 }
 0x4ca   :  { %v679_v12 = vadd.f32 %v739_v11, %v678_v0  ;;  %v891_v13 = vpop.f32.mrb[9].mxu0 }
 0x4cb   :  { %v681_v14 = vpop.f32.mrb[10].mxu0 }
 0x4cc   :  { %684 = vst [vmem:[#allocation13] sm:$0xff] %v679_v12  ;;  %v892_v15 = vpop.f32.mrb[11].mxu0 }
 0x4cd   :  { %1087 = shalt.err (!%p1084_p10)
}
 0x4ce   :  { %s1088_s10 = scalar_lea.hbm %s1354_s11, 128 }
 0x4cf   :  { %p1089_p11 = scmp.ne.s32.totalorder %s1354_s11, %s1088_s10  ;;  %p1092_p12 = scmp.lt.u32.totalorder %s1088_s10, %s1354_s11 }
 0x4d1   :  { %p1094_p13 = pnand %p1092_p12, %p1089_p11 }
 0x4d3   :  { %1097 = shalt.err (!%p1094_p13)
}
 0x4d4   :  { %694 = dma.vmem_to_hbm [thread:$0]  %s692_s13, 128, %s1354_s11, [#allocation4]  }
 0x4d5   :  { %1106 = dma.done.wait [#allocation4], 128  }
 0x4d6   :  { %1107 = vsyncadd [#allocation4], 4294967168 }
 0x4d7   :  { %698 = vsyncpa [#allocation3], 1 }
 0x4d8   :  { %699 = vsyncpa [#allocation6], 1 }
 0x4d9   :  { %700 = vsyncpa [#allocation9], 1 }
 0x4da   :  { %701 = vsyncpa [#allocation12], 1 }
 0x4db   :  { %702 = vsyncpa [#allocation4], 1 }

</bundles_post_ra>
